<compile_context>
chip_gen: v6e
topology: v6e:2x2x1
jax: 0.10.0
libtpu: 0.0.40
codegen_flags: <defaults>
</compile_context>

<pallas_src>
import jax
import jax.numpy as jnp
from jax import lax
from jax.experimental import pallas as pl
from jax.experimental.pallas import tpu as pltpu
import numpy as np

# small synthetic shapes (feature dims lane-dense: 128)
N = 64        # num nodes
E = 128       # num edges
EMB = 16      # emb_dim
HID = 128     # hidden_dim
RANK = 128    # rank_dim (== hidden_dim so edge_attr adds to both branches, as the torch code requires)


def gcn_conv_kernel(x_ref, w1_ref, b1_ref, w2_ref, b2_ref, vw_ref, vb_ref,
                    att1t_ref, att2t_ref, attvec_ref,
                    row_e1_ref, row_1e_ref, col_1e_ref, ea_ref, out_ref):
    f32 = jnp.float32
    bf16 = jnp.bfloat16

    x = x_ref[...]                                                     # [N, EMB]

    # ---- w1(x), w2(x): dense projections on the MXU ----
    x_sum = jnp.dot(x, w1_ref[...], preferred_element_type=f32) + b1_ref[...]    # [N, HID]
    x_prod = jnp.dot(x, w2_ref[...], preferred_element_type=f32) + b2_ref[...]   # [N, RANK]

    # ---- one-hot incidence matrices in natural (lane-contraction) layouts ----
    node_ids_en = lax.broadcasted_iota(jnp.int32, (E, N), 1)
    node_ids_ne = lax.broadcasted_iota(jnp.int32, (N, E), 0)
    oh_row = (row_e1_ref[...] == node_ids_en)            # [E, N]  oh_row[e,n]=1 iff row[e]==n
    oh_row_t = (row_1e_ref[...] == node_ids_ne)          # [N, E]
    oh_col_t = (col_1e_ref[...] == node_ids_ne)          # [N, E]  oh_col_t[n,e]=1 iff col[e]==n

    oh_row_bf = oh_row.astype(bf16)
    oh_row_f = oh_row.astype(f32)
    oh_col_t_bf = oh_col_t.astype(bf16)
    oh_col_t_f = oh_col_t.astype(f32)
    oh_row_t_f = oh_row_t.astype(f32)

    ones_e1 = jnp.ones((E, 1), f32)

    # ---- symmetric norm: deg = degree(row) + 1 in node layout [N,1] via MXU ----
    deg_n1 = jnp.dot(oh_row_t_f, ones_e1, preferred_element_type=f32) + 1.0      # [N, 1]
    dis_n1 = lax.rsqrt(deg_n1)                                                   # [N, 1]  deg^-1/2 (deg>=1)
    log_dis_n1 = -0.5 * jnp.log(deg_n1)                                          # [N, 1]  log(dis)

    # ---- lift source-node quantities along edges (gathers = one-hot MXU matmuls) ----
    xs_j = jnp.dot(oh_row_bf, x_sum.astype(bf16), preferred_element_type=f32)    # [E, HID]
    xp_j = jnp.dot(oh_row_bf, x_prod.astype(bf16), preferred_element_type=f32)   # [E, RANK]
    dis_row = jnp.dot(oh_row_f, dis_n1, preferred_element_type=f32)              # [E, 1]  dis[row[e]]

    ea = ea_ref[...]                                                             # [E, HID]
    relu_s = jnp.maximum(xs_j + ea, 0.0)
    relu_p = jnp.maximum(xp_j + ea, 0.0)

    # norm[e] = dis[row[e]] * dis[col[e]]; the dis[col] factor equals dis at the
    # destination node, so apply it per-node AFTER aggregation.
    msg_s = dis_row * relu_s                                                     # [E, HID]

    # ---- scatter-add over destination nodes: [N,E] x [E,HID] (natural layout) ----
    sum_agg = dis_n1 * jnp.dot(oh_col_t_bf, msg_s.astype(bf16),
                               preferred_element_type=f32)                       # [N, HID]

    # ---- scatter-multiply (init ones) in log domain: one matmul + one exp ----
    m_p = dis_row * relu_p                                                       # [E, RANK] >= 0
    is_zero = (relu_p <= 0.0).astype(f32)                                        # exact-zero messages
    log_m = jnp.where(relu_p > 0.0,
                      jnp.log(jnp.maximum(m_p, 1e-30)),                          # finite, avoids 0*(-inf)=NaN in matmul
                      0.0)                                                       # [E, RANK]
    slog = jnp.dot(oh_col_t_f, log_m, preferred_element_type=f32)                # [N, RANK]  sum of logs
    zcnt = jnp.dot(oh_col_t_f, is_zero, preferred_element_type=f32)              # [N, RANK]  # of zero msgs
    indeg_n1 = jnp.dot(oh_col_t_f, ones_e1, preferred_element_type=f32)          # [N, 1]
    log_prod = slog + indeg_n1 * log_dis_n1                                      # add dis[col] per incoming edge
    prod_agg = jnp.where(zcnt > 0.5, 0.0, jnp.exp(log_prod))                     # untouched nodes -> exp(0)=1

    # ---- v(prod_agg) ----
    prod_agg = jnp.dot(prod_agg, vw_ref[...], preferred_element_type=f32) + vb_ref[...]   # [N, HID]

    # ---- attention: softmax(att_vec(sigmoid([att1(prod), att2(sum)])) / 2, axis=1) ----
    a1 = jnp.dot(prod_agg, att1t_ref[...], preferred_element_type=f32)           # [N, 1]
    a2 = jnp.dot(sum_agg, att2t_ref[...], preferred_element_type=f32)            # [N, 1]
    s1 = jax.nn.sigmoid(a1)
    s2 = jax.nn.sigmoid(a2)
    w00 = attvec_ref[0, 0]; w01 = attvec_ref[0, 1]
    w10 = attvec_ref[1, 0]; w11 = attvec_ref[1, 1]
    l0 = (s1 * w00 + s2 * w01) * 0.5
    l1 = (s1 * w10 + s2 * w11) * 0.5
    m = jnp.maximum(l0, l1)
    e0 = jnp.exp(l0 - m)
    e1 = jnp.exp(l1 - m)
    inv = pl.reciprocal(e0 + e1, approx=True)
    att_prod = e0 * inv
    att_sum = e1 * inv

    out_ref[...] = att_prod * prod_agg + att_sum * sum_agg


def gcn_conv(x, row, col, edge_attr, p):
    vmem = pl.BlockSpec(memory_space=pltpu.MemorySpace.VMEM)
    smem = pl.BlockSpec(memory_space=pltpu.MemorySpace.SMEM)
    in_specs = [vmem] * 9 + [smem] + [vmem] * 4
    return pl.pallas_call(
        gcn_conv_kernel,
        out_shape=jax.ShapeDtypeStruct((N, HID), jnp.float32),
        in_specs=in_specs,
        out_specs=vmem,
    )(x, p["w1"], p["b1"], p["w2"], p["b2"], p["vw"], p["vb"],
      p["att1"].T, p["att2"].T, p["attvec"],
      row.reshape(E, 1), row.reshape(1, E), col.reshape(1, E), edge_attr)


def reference(x, row, col, edge_attr, p):
    """Pure-JAX reference mirroring the PyTorch forward."""
    x_sum = x @ p["w1"] + p["b1"]
    x_prod = x @ p["w2"] + p["b2"]
    deg = jnp.zeros((N,), jnp.float32).at[row].add(1.0) + 1.0
    dis = deg ** -0.5
    norm = dis[row] * dis[col]
    msg_sum = norm[:, None] * jax.nn.relu(x_sum[row] + edge_attr)
    msg_prod = norm[:, None] * jax.nn.relu(x_prod[row] + edge_attr)
    sum_agg = jnp.zeros((N, HID), jnp.float32).at[col].add(msg_sum)
    prod_agg = jnp.ones((N, RANK), jnp.float32).at[col].multiply(msg_prod)
    prod_agg = prod_agg @ p["vw"] + p["vb"]
    a1 = jnp.sum(prod_agg * p["att1"], axis=1, keepdims=True)
    a2 = jnp.sum(sum_agg * p["att2"], axis=1, keepdims=True)
    sig = jax.nn.sigmoid(jnp.concatenate([a1, a2], axis=1))
    logits = (sig @ p["attvec"].T) / 2.0
    att = jax.nn.softmax(logits, axis=1)
    return att[:, 0:1] * prod_agg + att[:, 1:2] * sum_agg


if __name__ == "__main__":
    key = jax.random.PRNGKey(0)
    ks = jax.random.split(key, 12)

    # deterministic synthetic parameters (torch Linear weights pre-transposed)
    params = {
        "w1": jax.random.normal(ks[0], (EMB, HID), jnp.float32) * 0.2,    # Linear(emb, hidden).weight.T
        "b1": jax.random.normal(ks[1], (1, HID), jnp.float32) * 0.1,
        "w2": jax.random.normal(ks[2], (EMB, RANK), jnp.float32) * 0.2,   # Linear(emb, rank).weight.T
        "b2": jax.random.normal(ks[3], (1, RANK), jnp.float32) * 0.1,
        "vw": jax.random.normal(ks[4], (RANK, HID), jnp.float32) * 0.2,   # Linear(rank, hidden).weight.T
        "vb": jax.random.normal(ks[5], (1, HID), jnp.float32) * 0.1,
        "att1": jax.random.normal(ks[6], (1, HID), jnp.float32) * 0.2,    # Linear(hidden, 1, bias=False).weight
        "att2": jax.random.normal(ks[7], (1, HID), jnp.float32) * 0.2,
        "attvec": jax.random.normal(ks[8], (2, 2), jnp.float32) * 0.5,    # Linear(2, 2, bias=False).weight
    }
    # TODO(synk): root_emb = Embedding(1, hidden) is defined in __init__ but never used in forward; omitted.

    x = jax.random.normal(ks[9], (N, EMB), jnp.float32)
    edge_index = jax.random.randint(ks[10], (2, E), 0, N, dtype=jnp.int32)
    row, col = edge_index[0], edge_index[1]
    edge_attr = jax.random.normal(ks[11], (E, HID), jnp.float32) * 0.5

    out = gcn_conv(x, row, col, edge_attr, params)
    out = jax.block_until_ready(out)

    ref = jax.block_until_ready(reference(x, row, col, edge_attr, params))
    # slightly looser tolerance accounts for the intentional bf16 MXU gather/scatter operands
    np.testing.assert_allclose(np.asarray(out), np.asarray(ref), rtol=2e-2, atol=2e-2)

    print("KERNEL_OK")
</pallas_src>

<mosaic_0001>
module attributes {stable_mosaic.version = 11 : i64} {
  func.func @gcn_conv_kernel(%arg0: memref<64x16xf32, #tpu.memory_space<vmem>>, %arg1: memref<16x128xf32, #tpu.memory_space<vmem>>, %arg2: memref<1x128xf32, #tpu.memory_space<vmem>>, %arg3: memref<16x128xf32, #tpu.memory_space<vmem>>, %arg4: memref<1x128xf32, #tpu.memory_space<vmem>>, %arg5: memref<128x128xf32, #tpu.memory_space<vmem>>, %arg6: memref<1x128xf32, #tpu.memory_space<vmem>>, %arg7: memref<128x1xf32, #tpu.memory_space<vmem>>, %arg8: memref<128x1xf32, #tpu.memory_space<vmem>>, %arg9: memref<2x2xf32, #tpu.memory_space<smem>>, %arg10: memref<128x1xi32, #tpu.memory_space<vmem>>, %arg11: memref<1x128xi32, #tpu.memory_space<vmem>>, %arg12: memref<1x128xi32, #tpu.memory_space<vmem>>, %arg13: memref<128x128xf32, #tpu.memory_space<vmem>>, %arg14: memref<64x128xf32, #tpu.memory_space<vmem>>) attributes {dimension_semantics = [], scalar_prefetch = 0 : i64, scratch_operands = 0 : i64, tpu.core_type = #tpu.core_type<tc>} {
    %c0 = arith.constant 0 : index
    %c0_0 = arith.constant 0 : index
    %0 = vector.load %arg0[%c0, %c0_0] : memref<64x16xf32, #tpu.memory_space<vmem>>, vector<64x16xf32>
    %c0_1 = arith.constant 0 : index
    %c0_2 = arith.constant 0 : index
    %1 = vector.load %arg1[%c0_1, %c0_2] : memref<16x128xf32, #tpu.memory_space<vmem>>, vector<16x128xf32>
    %cst = arith.constant dense<0.000000e+00> : vector<64x128xf32>
    %2 = tpu.matmul %0, %1, %cst {dimension_numbers = #tpu.dot_dimension_numbers<[1], [0], [0], [1], [0, 0, 1, 1], [], []>} : vector<64x16xf32>, vector<16x128xf32>, vector<64x128xf32> -> vector<64x128xf32>
    %c0_3 = arith.constant 0 : index
    %c0_4 = arith.constant 0 : index
    %3 = vector.load %arg2[%c0_3, %c0_4] : memref<1x128xf32, #tpu.memory_space<vmem>>, vector<1x128xf32>
    %4 = vector.broadcast %3 : vector<1x128xf32> to vector<64x128xf32>
    %5 = arith.addf %2, %4 : vector<64x128xf32>
    %c0_5 = arith.constant 0 : index
    %c0_6 = arith.constant 0 : index
    %6 = vector.load %arg3[%c0_5, %c0_6] : memref<16x128xf32, #tpu.memory_space<vmem>>, vector<16x128xf32>
    %cst_7 = arith.constant dense<0.000000e+00> : vector<64x128xf32>
    %7 = tpu.matmul %0, %6, %cst_7 {dimension_numbers = #tpu.dot_dimension_numbers<[1], [0], [0], [1], [0, 0, 1, 1], [], []>} : vector<64x16xf32>, vector<16x128xf32>, vector<64x128xf32> -> vector<64x128xf32>
    %c0_8 = arith.constant 0 : index
    %c0_9 = arith.constant 0 : index
    %8 = vector.load %arg4[%c0_8, %c0_9] : memref<1x128xf32, #tpu.memory_space<vmem>>, vector<1x128xf32>
    %9 = vector.broadcast %8 : vector<1x128xf32> to vector<64x128xf32>
    %10 = arith.addf %7, %9 : vector<64x128xf32>
    %11 = tpu.iota {dimensions = array<i32: 1>} : vector<128x64xi32>
    %12 = tpu.iota {dimensions = array<i32: 0>} : vector<64x128xi32>
    %c0_10 = arith.constant 0 : index
    %c0_11 = arith.constant 0 : index
    %13 = vector.load %arg10[%c0_10, %c0_11] : memref<128x1xi32, #tpu.memory_space<vmem>>, vector<128x1xi32>
    %14 = vector.broadcast %13 : vector<128x1xi32> to vector<128x64xi32>
    %15 = arith.cmpi eq, %14, %11 : vector<128x64xi32>
    %c0_12 = arith.constant 0 : index
    %c0_13 = arith.constant 0 : index
    %16 = vector.load %arg11[%c0_12, %c0_13] : memref<1x128xi32, #tpu.memory_space<vmem>>, vector<1x128xi32>
    %17 = vector.broadcast %16 : vector<1x128xi32> to vector<64x128xi32>
    %18 = arith.cmpi eq, %17, %12 : vector<64x128xi32>
    %c0_14 = arith.constant 0 : index
    %c0_15 = arith.constant 0 : index
    %19 = vector.load %arg12[%c0_14, %c0_15] : memref<1x128xi32, #tpu.memory_space<vmem>>, vector<1x128xi32>
    %20 = vector.broadcast %19 : vector<1x128xi32> to vector<64x128xi32>
    %21 = arith.cmpi eq, %20, %12 : vector<64x128xi32>
    %22 = arith.extui %15 : vector<128x64xi1> to vector<128x64xi32>
    %23 = arith.sitofp %22 : vector<128x64xi32> to vector<128x64xf32>
    %24 = arith.truncf %23 : vector<128x64xf32> to vector<128x64xbf16>
    %25 = arith.extui %15 : vector<128x64xi1> to vector<128x64xi32>
    %26 = arith.sitofp %25 : vector<128x64xi32> to vector<128x64xf32>
    %27 = arith.extui %21 : vector<64x128xi1> to vector<64x128xi32>
    %28 = arith.sitofp %27 : vector<64x128xi32> to vector<64x128xf32>
    %29 = arith.truncf %28 : vector<64x128xf32> to vector<64x128xbf16>
    %30 = arith.extui %21 : vector<64x128xi1> to vector<64x128xi32>
    %31 = arith.sitofp %30 : vector<64x128xi32> to vector<64x128xf32>
    %32 = arith.extui %18 : vector<64x128xi1> to vector<64x128xi32>
    %33 = arith.sitofp %32 : vector<64x128xi32> to vector<64x128xf32>
    %cst_16 = arith.constant 1.000000e+00 : f32
    %34 = vector.broadcast %cst_16 : f32 to vector<128x1xf32>
    %cst_17 = arith.constant dense<0.000000e+00> : vector<64x1xf32>
    %35 = tpu.matmul %33, %34, %cst_17 {dimension_numbers = #tpu.dot_dimension_numbers<[1], [0], [0], [1], [0, 0, 1, 1], [], []>} : vector<64x128xf32>, vector<128x1xf32>, vector<64x1xf32> -> vector<64x1xf32>
    %cst_18 = arith.constant 1.000000e+00 : f32
    %36 = vector.broadcast %cst_18 : f32 to vector<64x1xf32>
    %37 = arith.addf %35, %36 : vector<64x1xf32>
    %38 = math.rsqrt %37 : vector<64x1xf32>
    %39 = math.log %37 : vector<64x1xf32>
    %cst_19 = arith.constant -5.000000e-01 : f32
    %40 = vector.broadcast %cst_19 : f32 to vector<64x1xf32>
    %41 = arith.mulf %40, %39 : vector<64x1xf32>
    %42 = arith.truncf %5 : vector<64x128xf32> to vector<64x128xbf16>
    %cst_20 = arith.constant dense<0.000000e+00> : vector<128x128xf32>
    %43 = tpu.matmul %24, %42, %cst_20 {dimension_numbers = #tpu.dot_dimension_numbers<[1], [0], [0], [1], [0, 0, 1, 1], [], []>} : vector<128x64xbf16>, vector<64x128xbf16>, vector<128x128xf32> -> vector<128x128xf32>
    %44 = arith.truncf %10 : vector<64x128xf32> to vector<64x128xbf16>
    %cst_21 = arith.constant dense<0.000000e+00> : vector<128x128xf32>
    %45 = tpu.matmul %24, %44, %cst_21 {dimension_numbers = #tpu.dot_dimension_numbers<[1], [0], [0], [1], [0, 0, 1, 1], [], []>} : vector<128x64xbf16>, vector<64x128xbf16>, vector<128x128xf32> -> vector<128x128xf32>
    %cst_22 = arith.constant dense<0.000000e+00> : vector<128x1xf32>
    %46 = tpu.matmul %26, %38, %cst_22 {dimension_numbers = #tpu.dot_dimension_numbers<[1], [0], [0], [1], [0, 0, 1, 1], [], []>} : vector<128x64xf32>, vector<64x1xf32>, vector<128x1xf32> -> vector<128x1xf32>
    %c0_23 = arith.constant 0 : index
    %c0_24 = arith.constant 0 : index
    %47 = vector.load %arg13[%c0_23, %c0_24] : memref<128x128xf32, #tpu.memory_space<vmem>>, vector<128x128xf32>
    %48 = arith.addf %43, %47 : vector<128x128xf32>
    %cst_25 = arith.constant 0.000000e+00 : f32
    %49 = vector.broadcast %cst_25 : f32 to vector<128x128xf32>
    %50 = arith.maximumf %48, %49 : vector<128x128xf32>
    %51 = arith.addf %45, %47 : vector<128x128xf32>
    %cst_26 = arith.constant 0.000000e+00 : f32
    %52 = vector.broadcast %cst_26 : f32 to vector<128x128xf32>
    %53 = arith.maximumf %51, %52 : vector<128x128xf32>
    %54 = vector.broadcast %46 : vector<128x1xf32> to vector<128x128xf32>
    %55 = arith.mulf %54, %50 : vector<128x128xf32>
    %56 = arith.truncf %55 : vector<128x128xf32> to vector<128x128xbf16>
    %cst_27 = arith.constant dense<0.000000e+00> : vector<64x128xf32>
    %57 = tpu.matmul %29, %56, %cst_27 {dimension_numbers = #tpu.dot_dimension_numbers<[1], [0], [0], [1], [0, 0, 1, 1], [], []>} : vector<64x128xbf16>, vector<128x128xbf16>, vector<64x128xf32> -> vector<64x128xf32>
    %58 = vector.broadcast %38 : vector<64x1xf32> to vector<64x128xf32>
    %59 = arith.mulf %58, %57 : vector<64x128xf32>
    %60 = vector.broadcast %46 : vector<128x1xf32> to vector<128x128xf32>
    %61 = arith.mulf %60, %53 : vector<128x128xf32>
    %cst_28 = arith.constant 0.000000e+00 : f32
    %62 = vector.broadcast %cst_28 : f32 to vector<128x128xf32>
    %63 = arith.cmpf ole, %53, %62 : vector<128x128xf32>
    %64 = arith.extui %63 : vector<128x128xi1> to vector<128x128xi32>
    %65 = arith.sitofp %64 : vector<128x128xi32> to vector<128x128xf32>
    %cst_29 = arith.constant 0.000000e+00 : f32
    %66 = vector.broadcast %cst_29 : f32 to vector<128x128xf32>
    %67 = arith.cmpf ogt, %53, %66 : vector<128x128xf32>
    %cst_30 = arith.constant 1.000000e-30 : f32
    %68 = vector.broadcast %cst_30 : f32 to vector<128x128xf32>
    %69 = arith.maximumf %61, %68 : vector<128x128xf32>
    %70 = math.log %69 : vector<128x128xf32>
    %cst_31 = arith.constant 0.000000e+00 : f32
    %71 = vector.broadcast %cst_31 : f32 to vector<128x128xf32>
    %72 = arith.select %67, %70, %71 : vector<128x128xi1>, vector<128x128xf32>
    %cst_32 = arith.constant dense<0.000000e+00> : vector<64x128xf32>
    %73 = tpu.matmul %31, %72, %cst_32 {dimension_numbers = #tpu.dot_dimension_numbers<[1], [0], [0], [1], [0, 0, 1, 1], [], []>} : vector<64x128xf32>, vector<128x128xf32>, vector<64x128xf32> -> vector<64x128xf32>
    %cst_33 = arith.constant dense<0.000000e+00> : vector<64x128xf32>
    %74 = tpu.matmul %31, %65, %cst_33 {dimension_numbers = #tpu.dot_dimension_numbers<[1], [0], [0], [1], [0, 0, 1, 1], [], []>} : vector<64x128xf32>, vector<128x128xf32>, vector<64x128xf32> -> vector<64x128xf32>
    %cst_34 = arith.constant dense<0.000000e+00> : vector<64x1xf32>
    %75 = tpu.matmul %31, %34, %cst_34 {dimension_numbers = #tpu.dot_dimension_numbers<[1], [0], [0], [1], [0, 0, 1, 1], [], []>} : vector<64x128xf32>, vector<128x1xf32>, vector<64x1xf32> -> vector<64x1xf32>
    %76 = arith.mulf %75, %41 : vector<64x1xf32>
    %77 = vector.broadcast %76 : vector<64x1xf32> to vector<64x128xf32>
    %78 = arith.addf %73, %77 : vector<64x128xf32>
    %cst_35 = arith.constant 5.000000e-01 : f32
    %79 = vector.broadcast %cst_35 : f32 to vector<64x128xf32>
    %80 = arith.cmpf ogt, %74, %79 : vector<64x128xf32>
    %81 = math.exp %78 : vector<64x128xf32>
    %cst_36 = arith.constant 0.000000e+00 : f32
    %82 = vector.broadcast %cst_36 : f32 to vector<64x128xf32>
    %83 = arith.select %80, %82, %81 : vector<64x128xi1>, vector<64x128xf32>
    %c0_37 = arith.constant 0 : index
    %c0_38 = arith.constant 0 : index
    %84 = vector.load %arg5[%c0_37, %c0_38] : memref<128x128xf32, #tpu.memory_space<vmem>>, vector<128x128xf32>
    %cst_39 = arith.constant dense<0.000000e+00> : vector<64x128xf32>
    %85 = tpu.matmul %83, %84, %cst_39 {dimension_numbers = #tpu.dot_dimension_numbers<[1], [0], [0], [1], [0, 0, 1, 1], [], []>} : vector<64x128xf32>, vector<128x128xf32>, vector<64x128xf32> -> vector<64x128xf32>
    %c0_40 = arith.constant 0 : index
    %c0_41 = arith.constant 0 : index
    %86 = vector.load %arg6[%c0_40, %c0_41] : memref<1x128xf32, #tpu.memory_space<vmem>>, vector<1x128xf32>
    %87 = vector.broadcast %86 : vector<1x128xf32> to vector<64x128xf32>
    %88 = arith.addf %85, %87 : vector<64x128xf32>
    %c0_42 = arith.constant 0 : index
    %c0_43 = arith.constant 0 : index
    %89 = vector.load %arg7[%c0_42, %c0_43] : memref<128x1xf32, #tpu.memory_space<vmem>>, vector<128x1xf32>
    %cst_44 = arith.constant dense<0.000000e+00> : vector<64x1xf32>
    %90 = tpu.matmul %88, %89, %cst_44 {dimension_numbers = #tpu.dot_dimension_numbers<[1], [0], [0], [1], [0, 0, 1, 1], [], []>} : vector<64x128xf32>, vector<128x1xf32>, vector<64x1xf32> -> vector<64x1xf32>
    %c0_45 = arith.constant 0 : index
    %c0_46 = arith.constant 0 : index
    %91 = vector.load %arg8[%c0_45, %c0_46] : memref<128x1xf32, #tpu.memory_space<vmem>>, vector<128x1xf32>
    %cst_47 = arith.constant dense<0.000000e+00> : vector<64x1xf32>
    %92 = tpu.matmul %59, %91, %cst_47 {dimension_numbers = #tpu.dot_dimension_numbers<[1], [0], [0], [1], [0, 0, 1, 1], [], []>} : vector<64x128xf32>, vector<128x1xf32>, vector<64x1xf32> -> vector<64x1xf32>
    %93 = arith.negf %90 : vector<64x1xf32>
    %94 = math.exp %93 : vector<64x1xf32>
    %cst_48 = arith.constant 1.000000e+00 : f32
    %95 = vector.broadcast %cst_48 : f32 to vector<64x1xf32>
    %96 = arith.addf %95, %94 : vector<64x1xf32>
    %97 = arith.divf %95, %96 : vector<64x1xf32>
    %98 = arith.negf %92 : vector<64x1xf32>
    %99 = math.exp %98 : vector<64x1xf32>
    %cst_49 = arith.constant 1.000000e+00 : f32
    %100 = vector.broadcast %cst_49 : f32 to vector<64x1xf32>
    %101 = arith.addf %100, %99 : vector<64x1xf32>
    %102 = arith.divf %100, %101 : vector<64x1xf32>
    %c0_50 = arith.constant 0 : index
    %c0_51 = arith.constant 0 : index
    %103 = memref.load %arg9[%c0_50, %c0_51] : memref<2x2xf32, #tpu.memory_space<smem>>
    %c0_52 = arith.constant 0 : index
    %c1 = arith.constant 1 : index
    %104 = memref.load %arg9[%c0_52, %c1] : memref<2x2xf32, #tpu.memory_space<smem>>
    %c1_53 = arith.constant 1 : index
    %c0_54 = arith.constant 0 : index
    %105 = memref.load %arg9[%c1_53, %c0_54] : memref<2x2xf32, #tpu.memory_space<smem>>
    %c1_55 = arith.constant 1 : index
    %c1_56 = arith.constant 1 : index
    %106 = memref.load %arg9[%c1_55, %c1_56] : memref<2x2xf32, #tpu.memory_space<smem>>
    %107 = vector.broadcast %103 : f32 to vector<64x1xf32>
    %108 = arith.mulf %97, %107 : vector<64x1xf32>
    %109 = vector.broadcast %104 : f32 to vector<64x1xf32>
    %110 = arith.mulf %102, %109 : vector<64x1xf32>
    %111 = arith.addf %108, %110 : vector<64x1xf32>
    %cst_57 = arith.constant 5.000000e-01 : f32
    %112 = vector.broadcast %cst_57 : f32 to vector<64x1xf32>
    %113 = arith.mulf %111, %112 : vector<64x1xf32>
    %114 = vector.broadcast %105 : f32 to vector<64x1xf32>
    %115 = arith.mulf %97, %114 : vector<64x1xf32>
    %116 = vector.broadcast %106 : f32 to vector<64x1xf32>
    %117 = arith.mulf %102, %116 : vector<64x1xf32>
    %118 = arith.addf %115, %117 : vector<64x1xf32>
    %cst_58 = arith.constant 5.000000e-01 : f32
    %119 = vector.broadcast %cst_58 : f32 to vector<64x1xf32>
    %120 = arith.mulf %118, %119 : vector<64x1xf32>
    %121 = arith.maximumf %113, %120 : vector<64x1xf32>
    %122 = arith.subf %113, %121 : vector<64x1xf32>
    %123 = math.exp %122 : vector<64x1xf32>
    %124 = arith.subf %120, %121 : vector<64x1xf32>
    %125 = math.exp %124 : vector<64x1xf32>
    %126 = arith.addf %123, %125 : vector<64x1xf32>
    %127 = tpu.reciprocal %126 {approx = true} : vector<64x1xf32> -> vector<64x1xf32>
    %128 = arith.mulf %123, %127 : vector<64x1xf32>
    %129 = arith.mulf %125, %127 : vector<64x1xf32>
    %130 = vector.broadcast %128 : vector<64x1xf32> to vector<64x128xf32>
    %131 = arith.mulf %130, %88 : vector<64x128xf32>
    %132 = vector.broadcast %129 : vector<64x1xf32> to vector<64x128xf32>
    %133 = arith.mulf %132, %59 : vector<64x128xf32>
    %134 = arith.addf %131, %133 : vector<64x128xf32>
    %c0_59 = arith.constant 0 : index
    %c0_60 = arith.constant 0 : index
    %135 = vector.load %arg14[%c0_59, %c0_60] : memref<64x128xf32, #tpu.memory_space<vmem>>, vector<64x128xf32>
    tpu.vector_store %arg14[%c0_59, %c0_60], %134 {strides = array<i32>} : memref<64x128xf32, #tpu.memory_space<vmem>>, vector<64x128xf32>,
    return
  }
}

</mosaic_0001>

<bundles_post_ra>
// kernel: tpu_custom_call.1
= control target key start
LH: loop header
LB: loop body
LE: loop exit
PB: predicated region body
PF: predicated region fallthrough
CT: control target
= control target key end

     0   :  { %19 = vsyncpa [#allocation4], 0  ;;  %s5153_s0 = inlined_call_operand.vmem [shape: f32[64,16], index: 0, kind: input, shape index: {}]   ;;  %s5154_s1 = inlined_call_operand.vmem [shape: f32[16,128], index: 1, kind: input, shape index: {}]   ;;  %s5155_s2 = inlined_call_operand.vmem [shape: f32[1,128], index: 2, kind: input, shape index: {}]   ;;  %s5156_s3 = inlined_call_operand.vmem [shape: f32[16,128], index: 3, kind: input, shape index: {}]   ;;  %s5157_s4 = inlined_call_operand.vmem [shape: f32[1,128], index: 4, kind: input, shape index: {}]   ;;  %s5158_s5 = inlined_call_operand.vmem [shape: f32[128,128], index: 5, kind: input, shape index: {}]   ;;  %s5159_s6 = inlined_call_operand.vmem [shape: f32[1,128], index: 6, kind: input, shape index: {}]   ;;  %s5160_s7 = inlined_call_operand.vmem [shape: f32[128,1], index: 7, kind: input, shape index: {}]   ;;  %s5161_s8 = inlined_call_operand.vmem [shape: f32[128,1], index: 8, kind: input, shape index: {}]   ;;  %s5162_s9 = inlined_call_operand.vmem [shape: f32[2,2], index: 9, kind: input, shape index: {}]   ;;  %s5163_s10 = inlined_call_operand.vmem [shape: s32[128,1], index: 10, kind: input, shape index: {}]   ;;  %s5164_s11 = inlined_call_operand.vmem [shape: s32[1,128], index: 11, kind: input, shape index: {}]   ;;  %s5165_s12 = inlined_call_operand.vmem [shape: s32[1,128], index: 12, kind: input, shape index: {}]   ;;  %s5166_s13 = inlined_call_operand.vmem [shape: f32[128,128], index: 13, kind: input, shape index: {}]   ;;  %s5167_s14 = inlined_call_operand.hbm [shape: f32[64,128], index: 14, kind: output, shape index: {}]  }
   0x1   :  { %20 = vsyncpa [#allocation3], 0  ;;  %s45_s15 = sshll.u32 %s5162_s9, 4  ;;  %s46_s15 = int_to_ptr.vmem [resolvable:$true] %s45_s15 }
   0x2   :  { %s3774_s16 = scalar_lea.vmem %s46_s15, 32  ;;  %p3779_p1 = scmp.lt.s32.totalorder %s46_s15, %s46_s15 }
   0x3   :  { %p3775_p0 = scmp.ne.s32.totalorder %s46_s15, %s3774_s16  ;;  %p3780_p2 = scmp.lt.s32.totalorder %s3774_s16, %s3774_s16 }
   0x5   :  { %p3781_p3 = por %p3780_p2, %p3779_p1 }
   0x7   :  { %p3782_p4 = pnand %p3781_p3, %p3775_p0 }
   0x9   :  { %3785 = shalt.err (!%p3782_p4)
}
   0xa   :  { %s3810_s17 = smov [#allocation2]  }
   0xb   :  { %48 = dma.vmem_to_smem %s46_s15, 32, %s3810_s17, [#allocation4]  }
   0xc   :  { %3806 = dma.done.wait [#allocation4], 32  }
   0xd   :  { %3807 = vsyncadd [#allocation4], 4294967264 }
   0xe   :  { %60 = sfence }
   0xf   :  { %v71_v0 = vld [vmem:[%s5154_s1 + $0x8] sm:$0xff]  ;;  %v70_v1 = vld [vmem:[%s5154_s1] sm:$0xff]  ;;  %vm79_vm0 = vcmask 130048   ;;  %v64_v4 = vld [vmem:[%s5153_s0 + $0x10] sm:$0xff]  ;;  %v3811_v5 = vmov 0   ;;  %v5185_v6 = vmov 1.0   ;;  %v323_v10 = vlaneseq }
  0x10   :  { %v62_v2 = vld [vmem:[%s5153_s0] sm:$0xff]  ;;  %3088 = vmatprep.subr.mxu0 %v71_v0  ;;  %v63_v3 = vld [vmem:[%s5153_s0 + $0x8] sm:$0xff]  ;;  %3580 = vset.pattern.permute.xlu0 %v3811_v5  ;;  %v65_v8 = vld [vmem:[%s5153_s0 + $0x18] sm:$0xff]  ;;  %v3813_v43 = vmov 0.0   ;;  %vm661_vm11 = vcmask 523264   ;;  %s2343_s17 = sld [smem:[#allocation2]] }
  0x11   :  { %3092 = vmatprep.mubr.msk.f32.mxu0 %vm79_vm0, %v62_v2  ;;  %3089 = vmatpush3.msra.mxu0 %v71_v0  ;;  %v210_v7 = vld [vmem:[%s5156_s3 + $0x8] sm:$0xff]  ;;  %v66_v9 = vld [vmem:[%s5153_s0 + $0x20] sm:$0xff]  ;;  %v68_v13 = vld [vmem:[%s5153_s0 + $0x30] sm:$0xff]  ;;  %v3943_v14 = vshrl.u32 %v323_v10, 7  ;;  %v324_v40 = vand.u32 127, %v323_v10  ;;  %s3815_s18 = smov [#allocation5]  }
  0x12   :  { %3108 = vmatprep.mubr.msk.f32.mxu1 %vm79_vm0, %v62_v2  ;;  %3090 = vmatprep.subr.mxu0 %v70_v1  ;;  %v209_v11 = vld [vmem:[%s5156_s3] sm:$0xff]  ;;  %v67_v12 = vld [vmem:[%s5153_s0 + $0x28] sm:$0xff]  ;;  %v69_v16 = vld [vmem:[%s5153_s0 + $0x38] sm:$0xff] }
  0x13   :  { %3091 = vmatpush3.msra.mxu0 %v70_v1  ;;  %3581 = vset.pattern.permute.xlu1 %v3811_v5  ;;  %5199 = vst [vmem:[#allocation8_spill] sm:$0xff] %v3943_v14  ;;  %v3949_v15 = vld [vmem:[%s5164_s11] ss:$0 sm:$0xff]  ;;  %v336_v18 = vld [vmem:[%s5163_s10 + $0x10] sm:$0xff]  ;;  %v335_v19 = vld [vmem:[%s5163_s10 + $0x8] sm:$0xff]  ;;  %v4004_v23 = vadd.s32 8, %v3943_v14 }
  0x14   :  { %3093 = vmatmul.mubr.msk.f32.vlgmr.msra.gmra.mxu0 %vm79_vm0, %v63_v3  ;;  %3120 = vmatprep.subr.mxu0 %v5185_v6  ;;  %vm419_vm1 = vcmp.eq.s32.totalorder %v3949_v15, %v3943_v14  ;;  %v334_v17 = vld [vmem:[%s5163_s10] sm:$0xff]  ;;  %v337_v20 = vld [vmem:[%s5163_s10 + $0x18] sm:$0xff]  ;;  %v339_v22 = vld [vmem:[%s5163_s10 + $0x28] sm:$0xff]  ;;  %v4008_v24 = vadd.s32 16, %v3943_v14  ;;  %v4022_v27 = vadd.s32 24, %v3943_v14  ;;  %v4028_v28 = vadd.s32 32, %v3943_v14 }
  0x15   :  { %3121 = vmatpush3.msra.mxu0 %v5185_v6  ;;  %3095 = vmatprep.mubr.msk.f32.mxu0 %vm79_vm0, %v64_v4  ;;  %v338_v21 = vld [vmem:[%s5163_s10 + $0x20] sm:$0xff]  ;;  %5200 = vst [vmem:[#allocation9_spill] sm:$0xff] %v4004_v23  ;;  %v340_v25 = vld [vmem:[%s5163_s10 + $0x30] sm:$0xff]  ;;  %v341_v26 = vld [vmem:[%s5163_s10 + $0x38] sm:$0xff]  ;;  %vm420_vm2 = vcmp.eq.s32.totalorder %v3949_v15, %v4004_v23  ;;  %v4042_v31 = vadd.s32 40, %v3943_v14  ;;  %v4047_v32 = vadd.s32 48, %v3943_v14 }
  0x16   :  { %3122 = vmatprep.subr.mxu0 %v5185_v6  ;;  %3104 = vmatprep.subr.mxu1 %v210_v7  ;;  %vm421_vm3 = vcmp.eq.s32.totalorder %v3949_v15, %v4008_v24  ;;  %5201 = vst [vmem:[#allocation10_spill] sm:$0xff] %v4028_v28  ;;  %v342_v29 = vld [vmem:[%s5163_s10 + $0x40] sm:$0xff]  ;;  %v343_v30 = vld [vmem:[%s5163_s10 + $0x48] sm:$0xff]  ;;  %vm422_vm4 = vcmp.eq.s32.totalorder %v3949_v15, %v4022_v27  ;;  %v344_v33 = vld [vmem:[%s5163_s10 + $0x50] sm:$0xff]  ;;  %v4060_v35 = vadd.s32 56, %v3943_v14 }
  0x17   :  { %3123 = vmatpush3.msra.mxu0 %v5185_v6  ;;  %3105 = vmatpush3.msra.mxu1 %v210_v7  ;;  %5202 = vst [vmem:[#allocation11_spill] sm:$0xff] %v4042_v31  ;;  %vm423_vm5 = vcmp.eq.s32.totalorder %v3949_v15, %v4028_v28  ;;  %5203 = vst [vmem:[#allocation12_spill] sm:$0xff] %v4047_v32  ;;  %v345_v34 = vld [vmem:[%s5163_s10 + $0x58] sm:$0xff]  ;;  %vm424_vm6 = vcmp.eq.s32.totalorder %v3949_v15, %v4042_v31  ;;  %v346_v36 = vld [vmem:[%s5163_s10 + $0x60] sm:$0xff] }
  0x18   :  { %3096 = vmatmul.mubr.msk.f32.gmra.mxu0 %vm79_vm0, %v65_v8  ;;  %3124 = vmatprep.subr.mxu0 %v5185_v6  ;;  %5204 = vst [vmem:[#allocation13_spill] sm:$0xff] %v4060_v35  ;;  %vm425_vm7 = vcmp.eq.s32.totalorder %v3949_v15, %v4047_v32  ;;  %v347_v37 = vld [vmem:[%s5163_s10 + $0x68] sm:$0xff]  ;;  %vm426_vm8 = vcmp.eq.s32.totalorder %v3949_v15, %v4060_v35  ;;  %v348_v38 = vld [vmem:[%s5163_s10 + $0x70] sm:$0xff]  ;;  %v349_v39 = vld [vmem:[%s5163_s10 + $0x78] sm:$0xff] }
  0x19   :  { %3125 = vmatpush3.msra.mxu0 %v5185_v6  ;;  %3098 = vmatprep.mubr.msk.f32.mxu0 %vm79_vm0, %v66_v9 }
  0x1a   :  { %3126 = vmatprep.subr.mxu0 %v5185_v6  ;;  %3106 = vmatprep.subr.mxu1 %v209_v11 }
  0x1b   :  { %3127 = vmatpush3.msra.mxu0 %v5185_v6  ;;  %3107 = vmatpush3.msra.mxu1 %v209_v11 }
  0x1c   :  { %3099 = vmatmul.mubr.msk.f32.gmra.mxu0 %vm79_vm0, %v67_v12  ;;  %3128 = vmatprep.subr.mxu0 %v5185_v6 }
  0x1d   :  { %3129 = vmatpush3.msra.mxu0 %v5185_v6  ;;  %3101 = vmatprep.mubr.msk.f32.mxu0 %vm79_vm0, %v68_v13 }
  0x1e   :  { %3130 = vmatprep.subr.mxu0 %v5185_v6  ;;  %3109 = vmatmul.mubr.msk.f32.vlgmr.msra.gmra.mxu1 %vm79_vm0, %v63_v3 }
  0x1f   :  { %3131 = vmatpush3.msra.mxu0 %v5185_v6  ;;  %3111 = vmatprep.mubr.msk.f32.mxu1 %vm79_vm0, %v64_v4 }
  0x20   :  { %3102 = vmatmul.mubr.msk.f32.gmra.mxu0 %vm79_vm0, %v69_v16  ;;  %3132 = vmatprep.subr.mxu0 %v5185_v6 }
  0x21   :  { %3133 = vmatpush3.msra.mxu0 %v5185_v6  ;;  %3152 = vmatprep.mubr.msk.f32.mxu0 %vm419_vm1, %v5185_v6 }
  0x22   :  { %3134 = vmatprep.subr.mxu0 %v5185_v6  ;;  %3112 = vmatmul.mubr.msk.f32.gmra.mxu1 %vm79_vm0, %v65_v8 }
  0x23   :  { %3135 = vmatpush3.msra.mxu0 %v5185_v6  ;;  %3114 = vmatprep.mubr.msk.f32.mxu1 %vm79_vm0, %v66_v9 }
  0x24   :  { %3136 = vmatprep.subr.mxu0 %v5185_v6  ;;  %351 = vperm.xlu0 %3580, %v334_v17  }
  0x25   :  { %3137 = vmatpush3.msra.mxu0 %v5185_v6  ;;  %357 = vperm.xlu1 %3581, %v336_v18  }
  0x26   :  { %3138 = vmatprep.subr.mxu0 %v5185_v6  ;;  %3115 = vmatmul.mubr.msk.f32.gmra.mxu1 %vm79_vm0, %v67_v12 }
  0x27   :  { %3139 = vmatpush3.msra.mxu0 %v5185_v6  ;;  %3117 = vmatprep.mubr.msk.f32.mxu1 %vm79_vm0, %v68_v13 }
  0x28   :  { %3140 = vmatprep.subr.mxu0 %v5185_v6  ;;  %354 = vperm.xlu0 %3580, %v335_v19  }
  0x29   :  { %3141 = vmatpush3.msra.mxu0 %v5185_v6  ;;  %360 = vperm.xlu1 %3581, %v337_v20  }
  0x2a   :  { %3142 = vmatprep.subr.mxu0 %v5185_v6  ;;  %3118 = vmatmul.mubr.msk.f32.gmra.mxu1 %vm79_vm0, %v69_v16 }
  0x2b   :  { %3143 = vmatpush3.msra.mxu0 %v5185_v6 }
  0x2c   :  { %3144 = vmatprep.subr.mxu0 %v5185_v6  ;;  %363 = vperm.xlu0 %3580, %v338_v21  }
  0x2d   :  { %3145 = vmatpush3.msra.mxu0 %v5185_v6  ;;  %366 = vperm.xlu1 %3581, %v339_v22  }
  0x2e   :  { %3146 = vmatprep.subr.mxu0 %v5185_v6 }
  0x2f   :  { %3147 = vmatpush3.msra.mxu0 %v5185_v6 }
  0x30   :  { %3148 = vmatprep.subr.mxu0 %v5185_v6  ;;  %369 = vperm.xlu0 %3580, %v340_v25  }
  0x31   :  { %3149 = vmatpush3.msra.mxu0 %v5185_v6  ;;  %372 = vperm.xlu1 %3581, %v341_v26  }
  0x32   :  { %3150 = vmatprep.subr.mxu0 %v5185_v6 }
  0x33   :  { %3151 = vmatpush3.msra.mxu0 %v5185_v6 }
  0x34   :  { %3153 = vmatmul.mubr.msk.f32.vlgmr.msra.gmra.mxu0 %vm420_vm2, %v5185_v6  ;;  %375 = vperm.xlu0 %3580, %v342_v29  }
  0x35   :  { %3155 = vmatprep.mubr.msk.f32.mxu0 %vm421_vm3, %v5185_v6  ;;  %378 = vperm.xlu1 %3581, %v343_v30   ;;  %v2632_v30 = vld [vmem:[%s5155_s2] ss:$0 sm:$0xff] }
  0x38   :  { %3156 = vmatmul.mubr.msk.f32.gmra.mxu0 %vm422_vm4, %v5185_v6  ;;  %381 = vperm.xlu0 %3580, %v344_v33  }
  0x39   :  { %3158 = vmatprep.mubr.msk.f32.mxu0 %vm423_vm5, %v5185_v6  ;;  %384 = vperm.xlu1 %3581, %v345_v34  }
  0x3c   :  { %3159 = vmatmul.mubr.msk.f32.gmra.mxu0 %vm424_vm6, %v5185_v6  ;;  %387 = vperm.xlu0 %3580, %v346_v36  }
  0x3d   :  { %3161 = vmatprep.mubr.msk.f32.mxu0 %vm425_vm7, %v5185_v6  ;;  %390 = vperm.xlu1 %3581, %v347_v37  }
  0x40   :  { %3162 = vmatmul.mubr.msk.f32.gmra.mxu0 %vm426_vm8, %v5185_v6  ;;  %393 = vperm.xlu0 %3580, %v348_v38  }
  0x41   :  { %396 = vperm.xlu1 %3581, %v349_v39  }
  0x9f   :  { %v352_v41 = vpop.permute.xlu0 %351 }
  0xa0   :  { %vm398_vm9 = vcmp.eq.s32.totalorder %v352_v41, %v324_v40  ;;  %v358_v42 = vpop.permute.xlu1 %357 }
  0xa1   :  { %v2652_v44 = vsel %vm398_vm9, 1.0, %v3813_v43  ;;  %vm400_vm10 = vcmp.eq.s32.totalorder %v358_v42, %v324_v40 }
  0xa2   :  { %v4082_v45 = vsel %vm400_vm10, 1.0, %v3813_v43  ;;  %3180 = vmatprep.mubr.msk.f32.mxu1 %vm661_vm11, %v2652_v44 }
  0xa3   :  { %v355_v46 = vpop.permute.xlu0 %354 }
  0xa4   :  { %vm399_vm12 = vcmp.eq.s32.totalorder %v355_v46, %v324_v40  ;;  %v361_v47 = vpop.permute.xlu1 %360 }
  0xa5   :  { %v4085_v48 = vsel %vm399_vm12, 1.0, %v3813_v43  ;;  %vm401_vm13 = vcmp.eq.s32.totalorder %v361_v47, %v324_v40 }
  0xa6   :  { %v4088_v49 = vpack.c.bf16 %v4085_v48, %v2652_v44  ;;  %v4090_v50 = vsel %vm401_vm13, 1.0, %v3813_v43 }
  0xa7   :  { %v4094_v51 = vpack.c.bf16 %v4090_v50, %v4082_v45  ;;  %v364_v52 = vpop.permute.xlu0 %363 }
  0xa8   :  { %v367_v53 = vpop.permute.xlu1 %366  ;;  %vm402_vm14 = vcmp.eq.s32.totalorder %v364_v52, %v324_v40  ;;  %3212 = vmatprep.mubr.msk.bf16.mxu0 %vm661_vm11, %v4088_v49 }
  0xa9   :  { %vm403_vm15 = vcmp.eq.s32.totalorder %v367_v53, %v324_v40  ;;  %v4098_v54 = vsel %vm402_vm14, 1.0, %v3813_v43 }
  0xaa   :  { %v4100_v55 = vsel %vm403_vm15, 1.0, %v3813_v43 }
  0xab   :  { %v4104_v56 = vpack.c.bf16 %v4100_v55, %v4098_v54  ;;  %v370_v57 = vpop.permute.xlu0 %369 }
  0xac   :  { %v373_v58 = vpop.permute.xlu1 %372  ;;  %vm404_vm0 = vcmp.eq.s32.totalorder %v370_v57, %v324_v40 }
  0xad   :  { %vm405_vm1 = vcmp.eq.s32.totalorder %v373_v58, %v324_v40  ;;  %v4106_v59 = vsel %vm404_vm0, 1.0, %v3813_v43 }
  0xae   :  { %v4108_v60 = vsel %vm405_vm1, 1.0, %v3813_v43 }
  0xaf   :  { %v4112_v61 = vpack.c.bf16 %v4108_v60, %v4106_v59  ;;  %v376_v62 = vpop.permute.xlu0 %375 }
  0xb0   :  { %v379_v63 = vpop.permute.xlu1 %378  ;;  %vm406_vm2 = vcmp.eq.s32.totalorder %v376_v62, %v324_v40 }
  0xb1   :  { %vm407_vm3 = vcmp.eq.s32.totalorder %v379_v63, %v324_v40  ;;  %v4114_v0 = vsel %vm406_vm2, 1.0, %v3813_v43 }
  0xb2   :  { %v4116_v1 = vsel %vm407_vm3, 1.0, %v3813_v43 }
  0xb3   :  { %v4120_v2 = vpack.c.bf16 %v4116_v1, %v4114_v0  ;;  %v382_v3 = vpop.permute.xlu0 %381 }
  0xb4   :  { %v385_v4 = vpop.permute.xlu1 %384  ;;  %vm408_vm4 = vcmp.eq.s32.totalorder %v382_v3, %v324_v40 }
  0xb5   :  { %vm409_vm5 = vcmp.eq.s32.totalorder %v385_v4, %v324_v40  ;;  %v4122_v5 = vsel %vm408_vm4, 1.0, %v3813_v43 }
  0xb6   :  { %v4124_v7 = vsel %vm409_vm5, 1.0, %v3813_v43 }
  0xb7   :  { %v4128_v8 = vpack.c.bf16 %v4124_v7, %v4122_v5  ;;  %v388_v9 = vpop.permute.xlu0 %387 }
  0xb8   :  { %v391_v10 = vpop.permute.xlu1 %390  ;;  %vm410_vm6 = vcmp.eq.s32.totalorder %v388_v9, %v324_v40 }
  0xb9   :  { %vm411_vm7 = vcmp.eq.s32.totalorder %v391_v10, %v324_v40  ;;  %v4130_v11 = vsel %vm410_vm6, 1.0, %v3813_v43 }
  0xba   :  { %v4132_v12 = vsel %vm411_vm7, 1.0, %v3813_v43 }
  0xbb   :  { %v4136_v13 = vpack.c.bf16 %v4132_v12, %v4130_v11  ;;  %v394_v15 = vpop.permute.xlu0 %393 }
  0xbc   :  { %v397_v16 = vpop.permute.xlu1 %396  ;;  %vm412_vm8 = vcmp.eq.s32.totalorder %v394_v15, %v324_v40 }
  0xbd   :  { %vm413_vm9 = vcmp.eq.s32.totalorder %v397_v16, %v324_v40  ;;  %v4138_v17 = vsel %vm412_vm8, 1.0, %v3813_v43 }
  0xbe   :  { %v4140_v18 = vsel %vm413_vm9, 1.0, %v3813_v43 }
  0xbf   :  { %v4144_v19 = vpack.c.bf16 %v4140_v18, %v4138_v17 }
  0xd4   :  { %v3094_v20 = vpop.f32.mrf.mxu0 }
  0xd5   :  { %v176_v46 = vadd.f32 %v3094_v20, %v2632_v30 }
  0xd6   :  { %v170_v21 = vpop.f32.mrf.mxu0 }
  0xd7   :  { %v171_v47 = vadd.f32 %v2632_v30, %v170_v21 }
  0xd8   :  { %v3097_v22 = vpop.f32.mrf.mxu0 }
  0xd9   :  { %v186_v40 = vadd.f32 %v3097_v22, %v2632_v30  ;;  %v653_v52 = vpack.c.bf16 %v176_v46, %v171_v47 }
  0xda   :  { %v180_v25 = vpop.f32.mrf.mxu0 }
  0xdb   :  { %v181_v41 = vadd.f32 %v2632_v30, %v180_v25 }
  0xdc   :  { %v3100_v26 = vpop.f32.mrf.mxu0 }
  0xdd   :  { %v196_v34 = vadd.f32 %v3100_v26, %v2632_v30  ;;  %v654_v44 = vpack.c.bf16 %v186_v40, %v181_v41 }
  0xde   :  { %v190_v29 = vpop.f32.mrf.mxu0  ;;  %v4153_v63 = vpop.f32.mrf.mxu1 }
  0xdf   :  { %v191_v36 = vadd.f32 %v2632_v30, %v190_v29 }
  0xe0   :  { %v3103_v33 = vpop.f32.mrf.mxu0  ;;  %v4155_v9 = vpop.f32.mrf.mxu1 }
  0xe1   :  { %v206_v37 = vadd.f32 %v3103_v33, %v2632_v30  ;;  %v655_v42 = vpack.c.bf16 %v196_v34, %v191_v36 }
  0xe2   :  { %v200_v38 = vpop.f32.mrf.mxu0  ;;  %v3113_v20 = vpop.f32.mrf.mxu1 }
  0xe3   :  { %v201_v39 = vadd.f32 %v2632_v30, %v200_v38 }
  0xe4   :  { %v294_v26 = vpop.f32.mrf.mxu1 }
  0xe5   :  { %v656_v43 = vpack.c.bf16 %v206_v37, %v201_v39 }
  0xe6   :  { %v3116_v33 = vpop.f32.mrf.mxu1 }
  0xe7   :  { %3204 = vmatprep.subr.bf16.mxu0 %v656_v43 }
  0xe8   :  { %3205 = vmatpush3.bf16.msra.mxu0 %v656_v43  ;;  %v304_v37 = vpop.f32.mrf.mxu1  ;;  %v2641_v43 = vld [vmem:[%s5157_s4] ss:$0 sm:$0xff]  ;;  %s2838_s4 = sld [smem:[#allocation2 + $0x80]] }
  0xe9   :  { %3206 = vmatprep.subr.bf16.mxu0 %v655_v42 }
  0xea   :  { %v3119_v40 = vpop.f32.mrf.mxu1 }
  0xeb   :  { %v320_v47 = vadd.f32 %v3119_v40, %v2641_v43 }
  0xec   :  { %3207 = vmatpush3.bf16.msra.mxu0 %v655_v42 }
  0xed   :  { %3208 = vmatprep.subr.bf16.mxu0 %v654_v44 }
  0xf0   :  { %3209 = vmatpush3.bf16.msra.mxu0 %v654_v44  ;;  %v314_v44 = vpop.f32.mrf.mxu1 }
  0xf1   :  { %3210 = vmatprep.subr.bf16.mxu0 %v653_v52 }
  0xf4   :  { %v3154_v53 = vpop.f32.mrf.mxu0  ;;  %3211 = vmatpush3.bf16.msra.mxu0 %v653_v52  ;;  %v315_v52 = vadd.f32 %v2641_v43, %v314_v44 }
  0xf5   :  { %v4181_v34 = vadd.f32 1.0, %v3154_v53 }
  0xf6   :  { %v582_v57 = vpop.f32.mrf.mxu0 }
  0xf7   :  { %3213 = vmatmul.mubr.msk.bf16.vlgmr.msra.gmra.mxu0 %vm661_vm11, %v4094_v51  ;;  %5211 = vst [vmem:[#allocation20_spill] sm:$0xff] %v4181_v34  ;;  %v4184_v36 = vadd.f32 1.0, %v582_v57  ;;  %v310_v57 = vadd.f32 %v3116_v33, %v2641_v43  ;;  %v290_v33 = vadd.f32 %v4153_v63, %v2641_v43 }
  0xf8   :  { %v3157_v58 = vpop.f32.mrf.mxu0  ;;  %3216 = vmatprep.mubr.msk.bf16.mxu0 %vm661_vm11, %v4104_v56 }
  0xf9   :  { %v4171_v29 = vadd.f32 1.0, %v3157_v58  ;;  %5212 = vst [vmem:[#allocation21_spill] sm:$0xff] %v4184_v36  ;;  %v305_v58 = vadd.f32 %v2641_v43, %v304_v37  ;;  %v285_v37 = vadd.f32 %v2641_v43, %v4155_v9 }
  0xfa   :  { %v592_v62 = vpop.f32.mrf.mxu0 }
  0xfb   :  { %5209 = vst [vmem:[#allocation18_spill] sm:$0xff] %v4171_v29  ;;  %v4178_v30 = vadd.f32 1.0, %v592_v62  ;;  %v659_v40 = vpack.c.bf16 %v310_v57, %v305_v58  ;;  %v4302_v58 = vld [vmem:[%s5166_s13 + $0x70] sm:$0xff] }
  0xfc   :  { %v3160_v3 = vpop.f32.mrf.mxu0 }
  0xfd   :  { %v4163_v21 = vadd.f32 1.0, %v3160_v3  ;;  %5210 = vst [vmem:[#allocation19_spill] sm:$0xff] %v4178_v30  ;;  %v660_v3 = vpack.c.bf16 %v320_v47, %v315_v52 }
  0xfe   :  { %v602_v4 = vpop.f32.mrf.mxu0 }
  0xff   :  { %3217 = vmatmul.mubr.msk.bf16.gmra.mxu0 %vm661_vm11, %v4112_v61  ;;  %5206 = vst [vmem:[#allocation15_spill] sm:$0xff] %v4163_v21  ;;  %v4168_v25 = vadd.f32 1.0, %v602_v4 }
 0x100   :  { %v3163_v10 = vpop.f32.mrf.mxu0  ;;  %3220 = vmatprep.mubr.msk.bf16.mxu0 %vm661_vm11, %v4120_v2 }
 0x101   :  { %v4161_v15 = vadd.f32 1.0, %v3163_v10  ;;  %5208 = vst [vmem:[#allocation17_spill] sm:$0xff] %v4168_v25  ;;  %v300_v10 = vadd.f32 %v3113_v20, %v2641_v43  ;;  %v657_v20 = vpack.c.bf16 %v290_v33, %v285_v37  ;;  %v4316_v37 = vld [vmem:[%s5166_s13 + $0x60] sm:$0xff] }
 0x102   :  { %v612_v16 = vpop.f32.mrf.mxu0 }
 0x103   :  { %5205 = vst [vmem:[#allocation14_spill] sm:$0xff] %v4161_v15  ;;  %3582 = vrsqrt.f32 %v4161_v15  ;;  %v4166_v22 = vadd.f32 1.0, %v612_v16  ;;  %v295_v16 = vadd.f32 %v2641_v43, %v294_v26 }
 0x105   :  { %5207 = vst [vmem:[#allocation16_spill] sm:$0xff] %v4166_v22  ;;  %3584 = vrsqrt.f32 %v4166_v22  ;;  %v658_v44 = vpack.c.bf16 %v300_v10, %v295_v16  ;;  %v4308_v16 = vld [vmem:[%s5166_s13 + $0x78] sm:$0xff] }
 0x106   :  { %3586 = vrsqrt.f32 %v4163_v21 }
 0x107   :  { %3221 = vmatmul.mubr.msk.bf16.gmra.mxu0 %vm661_vm11, %v4128_v8  ;;  %3588 = vrsqrt.f32 %v4168_v25 }
 0x108   :  { %3224 = vmatprep.mubr.msk.bf16.mxu0 %vm661_vm11, %v4136_v13  ;;  %3590 = vrsqrt.f32 %v4171_v29 }
 0x109   :  { %3592 = vrsqrt.f32 %v4178_v30 }
 0x10a   :  { %3594 = vrsqrt.f32 %v4181_v34 }
 0x10b   :  { %3596 = vrsqrt.f32 %v4184_v36 }
 0x10f   :  { %3225 = vmatmul.mubr.msk.bf16.gmra.mxu0 %vm661_vm11, %v4144_v19 }
 0x110   :  { %v4190_v38 = vpop.eup %3582 }
 0x111   :  { %5213 = vst [vmem:[#allocation22_spill] sm:$0xff] %v4190_v38  ;;  %3164 = vmatprep.subr.mxu1 %v4190_v38 }
 0x112   :  { %v4194_v39 = vpop.eup %3584  ;;  %3165 = vmatpush3.msra.mxu1 %v4190_v38 }
 0x113   :  { %5214 = vst [vmem:[#allocation23_spill] sm:$0xff] %v4194_v39  ;;  %3166 = vmatprep.subr.mxu1 %v4194_v39  ;;  %v4198_v41 = vpop.eup %3586 }
 0x114   :  { %5215 = vst [vmem:[#allocation24_spill] sm:$0xff] %v4198_v41  ;;  %3167 = vmatpush3.msra.mxu1 %v4194_v39  ;;  %v4202_v42 = vpop.eup %3588 }
 0x115   :  { %3168 = vmatprep.subr.mxu1 %v4198_v41  ;;  %5216 = vst [vmem:[#allocation25_spill] sm:$0xff] %v4202_v42  ;;  %v4209_v46 = vpop.eup %3590 }
 0x116   :  { %3169 = vmatpush3.msra.mxu1 %v4198_v41  ;;  %5217 = vst [vmem:[#allocation26_spill] sm:$0xff] %v4209_v46  ;;  %v4213_v53 = vpop.eup %3592 }
 0x117   :  { %3170 = vmatprep.subr.mxu1 %v4202_v42  ;;  %5218 = vst [vmem:[#allocation27_spill] sm:$0xff] %v4213_v53  ;;  %v4217_v62 = vpop.eup %3594 }
 0x118   :  { %3171 = vmatpush3.msra.mxu1 %v4202_v42  ;;  %5219 = vst [vmem:[#allocation28_spill] sm:$0xff] %v4217_v62  ;;  %v4221_v4 = vpop.eup %3596 }
 0x119   :  { %3172 = vmatprep.subr.mxu1 %v4209_v46  ;;  %5220 = vst [vmem:[#allocation29_spill] sm:$0xff] %v4221_v4 }
 0x11a   :  { %3173 = vmatpush3.msra.mxu1 %v4209_v46 }
 0x11b   :  { %3174 = vmatprep.subr.mxu1 %v4213_v53 }
 0x11c   :  { %3175 = vmatpush3.msra.mxu1 %v4213_v53 }
 0x11d   :  { %3176 = vmatprep.subr.mxu1 %v4217_v62 }
 0x11e   :  { %3177 = vmatpush3.msra.mxu1 %v4217_v62 }
 0x11f   :  { %3178 = vmatprep.subr.mxu1 %v4221_v4 }
 0x120   :  { %3179 = vmatpush3.msra.mxu1 %v4221_v4 }
 0x121   :  { %3181 = vmatmul.mubr.msk.f32.vlgmr.msra.gmra.mxu1 %vm661_vm11, %v4085_v48  ;;  %3228 = vmatprep.subr.bf16.mxu1 %v660_v3 }
 0x122   :  { %3183 = vmatprep.mubr.msk.f32.mxu1 %vm661_vm11, %v4082_v45  ;;  %3229 = vmatpush3.bf16.msra.mxu1 %v660_v3 }
 0x123   :  { %3230 = vmatprep.subr.bf16.mxu1 %v659_v40 }
 0x125   :  { %3184 = vmatmul.mubr.msk.f32.gmra.mxu1 %vm661_vm11, %v4090_v50 }
 0x126   :  { %3186 = vmatprep.mubr.msk.f32.mxu1 %vm661_vm11, %v4098_v54  ;;  %3231 = vmatpush3.bf16.msra.mxu1 %v659_v40 }
 0x127   :  { %3232 = vmatprep.subr.bf16.mxu1 %v658_v44 }
 0x129   :  { %3187 = vmatmul.mubr.msk.f32.gmra.mxu1 %vm661_vm11, %v4100_v55 }
 0x12a   :  { %3189 = vmatprep.mubr.msk.f32.mxu1 %vm661_vm11, %v4106_v59  ;;  %3233 = vmatpush3.bf16.msra.mxu1 %v658_v44  ;;  %v4321_v44 = vld [vmem:[%s5166_s13 + $0x68] sm:$0xff] }
 0x12b   :  { %3234 = vmatprep.subr.bf16.mxu1 %v657_v20 }
 0x12d   :  { %3190 = vmatmul.mubr.msk.f32.gmra.mxu1 %vm661_vm11, %v4108_v60 }
 0x12e   :  { %3192 = vmatprep.mubr.msk.f32.mxu1 %vm661_vm11, %v4114_v0  ;;  %3235 = vmatpush3.bf16.msra.mxu1 %v657_v20 }
 0x131   :  { %3193 = vmatmul.mubr.msk.f32.gmra.mxu1 %vm661_vm11, %v4116_v1 }
 0x132   :  { %3195 = vmatprep.mubr.msk.f32.mxu1 %vm661_vm11, %v4122_v5 }
 0x135   :  { %3196 = vmatmul.mubr.msk.f32.gmra.mxu1 %vm661_vm11, %v4124_v7 }
 0x136   :  { %3198 = vmatprep.mubr.msk.f32.mxu1 %vm661_vm11, %v4130_v11 }
 0x139   :  { %3199 = vmatmul.mubr.msk.f32.gmra.mxu1 %vm661_vm11, %v4132_v12 }
 0x13a   :  { %3201 = vmatprep.mubr.msk.f32.mxu1 %vm661_vm11, %v4138_v17 }
 0x13d   :  { %3202 = vmatmul.mubr.msk.f32.gmra.mxu1 %vm661_vm11, %v4140_v18  ;;  %v4287_v18 = vld [vmem:[%s5165_s12] ss:$0 sm:$0xff]  ;;  %s2620_s12 = sshll.u32 %s3815_s18, 4  ;;  %s2621_s12 = int_to_ptr.vmem [resolvable:$true] %s2620_s12 }
 0x13e   :  { %3236 = vmatprep.mubr.msk.bf16.mxu1 %vm661_vm11, %v4088_v49  ;;  %vm432_vm10 = vcmp.eq.s32.totalorder %v4287_v18, %v3943_v14  ;;  %s3786_s19 = scalar_lea.vmem %s2621_s12, 1024  ;;  %p3791_p6 = scmp.lt.s32.totalorder %s2621_s12, %s2621_s12 }
 0x13f   :  { %p3787_p5 = scmp.ne.s32.totalorder %s2621_s12, %s3786_s19  ;;  %p3792_p7 = scmp.lt.s32.totalorder %s3786_s19, %s3786_s19 }
 0x141   :  { %3237 = vmatmul.mubr.msk.bf16.vlgmr.msra.gmra.mxu1 %vm661_vm11, %v4094_v51  ;;  %p3793_p8 = por %p3792_p7, %p3791_p6 }
 0x142   :  { %3240 = vmatprep.mubr.msk.bf16.mxu1 %vm661_vm11, %v4104_v56 }
 0x143   :  { %p3794_p9 = pnand %p3793_p8, %p3787_p5 }
 0x149   :  { %3241 = vmatmul.mubr.msk.bf16.gmra.mxu1 %vm661_vm11, %v4112_v61 }
 0x14a   :  { %3244 = vmatprep.mubr.msk.bf16.mxu1 %vm661_vm11, %v4120_v2 }
 0x151   :  { %3245 = vmatmul.mubr.msk.bf16.gmra.mxu1 %vm661_vm11, %v4128_v8 }
 0x152   :  { %3248 = vmatprep.mubr.msk.bf16.mxu1 %vm661_vm11, %v4136_v13 }
 0x159   :  { %3249 = vmatmul.mubr.msk.bf16.gmra.mxu1 %vm661_vm11, %v4144_v19  ;;  %vm433_vm11 = vcmp.eq.s32.totalorder %v4287_v18, %v4004_v23 }
 0x15a   :  { %3308 = vmatprep.mubr.msk.f32.mxu1 %vm432_vm10, %v5185_v6  ;;  %vm2724_vm12 = vmpackc.low %vm433_vm11, %vm432_vm10 }
 0x1e1   :  { %v3182_v45 = vpop.f32.mrf.mxu1 }
 0x1e3   :  { %v776_v48 = vpop.f32.mrf.mxu1 }
 0x1e5   :  { %v3185_v49 = vpop.f32.mrf.mxu1 }
 0x1e7   :  { %v786_v50 = vpop.f32.mrf.mxu1 }
 0x1e9   :  { %v3188_v51 = vpop.f32.mrf.mxu1 }
 0x1eb   :  { %v796_v54 = vpop.f32.mrf.mxu1 }
 0x1ed   :  { %v3191_v55 = vpop.f32.mrf.mxu1 }
 0x1ef   :  { %v806_v56 = vpop.f32.mrf.mxu1 }
 0x1f1   :  { %v3194_v59 = vpop.f32.mrf.mxu1 }
 0x1f3   :  { %v816_v60 = vpop.f32.mrf.mxu1 }
 0x1f5   :  { %v3197_v61 = vpop.f32.mrf.mxu1 }
 0x1f7   :  { %v826_v0 = vpop.f32.mrf.mxu1 }
 0x1f9   :  { %v3200_v1 = vpop.f32.mrf.mxu1 }
 0x1fb   :  { %v836_v2 = vpop.f32.mrf.mxu1 }
 0x1fd   :  { %v3203_v5 = vpop.f32.mrf.mxu1 }
 0x1fe   :  { %1198 = vperm.xlu1 %3581, %v3203_v5   ;;  %v4370_v5 = vld [vmem:[%s5166_s13 + $0x40] sm:$0xff] }
 0x1ff   :  { %v846_v7 = vpop.f32.mrf.mxu1 }
 0x200   :  { %1193 = vperm.xlu0 %3580, %v846_v7  }
 0x201   :  { %v4274_v8 = vpop.f32.mrf.mxu1 }
 0x202   :  { %1188 = vperm.xlu1 %3581, %v3200_v1  }
 0x203   :  { %v4276_v11 = vpop.f32.mrf.mxu1 }
 0x204   :  { %1183 = vperm.xlu0 %3580, %v836_v2  }
 0x205   :  { %v4278_v12 = vpop.f32.mrf.mxu1 }
 0x206   :  { %1178 = vperm.xlu1 %3581, %v3197_v61  }
 0x207   :  { %v4280_v13 = vpop.f32.mrf.mxu1 }
 0x208   :  { %1173 = vperm.xlu0 %3580, %v826_v0   ;;  %v4359_v0 = vld [vmem:[%s5166_s13 + $0x48] sm:$0xff] }
 0x209   :  { %v4282_v17 = vpop.f32.mrf.mxu1 }
 0x20a   :  { %1168 = vperm.xlu1 %3581, %v3194_v59   ;;  %v4348_v59 = vld [vmem:[%s5166_s13 + $0x50] sm:$0xff] }
 0x20b   :  { %v4289_v19 = vpop.f32.mrf.mxu1 }
 0x20c   :  { %1163 = vperm.xlu0 %3580, %v816_v60  }
 0x20d   :  { %v3243_v63 = vpop.f32.mrf.mxu1 }
 0x20e   :  { %1158 = vperm.xlu1 %3581, %v3191_v55  }
 0x20f   :  { %v4293_v9 = vpop.f32.mrf.mxu1 }
 0x210   :  { %1153 = vperm.xlu0 %3580, %v806_v56  }
 0x211   :  { %v3246_v26 = vpop.f32.mrf.mxu1 }
 0x212   :  { %1148 = vperm.xlu1 %3581, %v3188_v51   ;;  %v5168_v51 = vmov 1.0|1.0   ;;  %v1083_v60 = vadd.f32 %v3246_v26, %v4348_v59 }
 0x213   :  { %v1074_v43 = vpop.f32.mrf.mxu1  ;;  %3268 = vmatprep.mubr.msk.bf16.mxu0 %vm2724_vm12, %v5168_v51 }
 0x214   :  { %1143 = vperm.xlu0 %3580, %v796_v54   ;;  %v4339_v54 = vld [vmem:[%s5166_s13 + $0x58] sm:$0xff]  ;;  %v4373_v7 = vmax.f32 %v1083_v60, 0.0  ;;  %v1075_v26 = vadd.f32 %v1074_v43, %v4370_v5  ;;  %v4392_v43 = vld [vmem:[%s5166_s13 + $0x30] sm:$0xff] }
 0x215   :  { %v3247_v47 = vpop.f32.mrf.mxu1 }
 0x216   :  { %1138 = vperm.xlu1 %3581, %v3185_v49   ;;  %v1086_v55 = vadd.f32 %v3247_v47, %v4339_v54  ;;  %v4381_v47 = vld [vmem:[%s5166_s13 + $0x38] sm:$0xff]  ;;  %vm1364_vm2 = vcmp.le.f32.partialorder %v4373_v7, 0.0 }
 0x217   :  { %v1077_v52 = vpop.f32.mrf.mxu1 }
 0x218   :  { %1133 = vperm.xlu0 %3580, %v786_v50   ;;  %v4362_v1 = vmax.f32 %v1086_v55, 0.0  ;;  %v1078_v2 = vadd.f32 %v1077_v52, %v4359_v0  ;;  %v1070_v52 = vadd.f32 %v3243_v63, %v4381_v47  ;;  %v4404_v63 = vld [vmem:[%s5166_s13 + $0x28] sm:$0xff] }
 0x219   :  { %v3250_v57 = vpop.f32.mrf.mxu1 }
 0x21a   :  { %1128 = vperm.xlu1 %3581, %v3182_v45   ;;  %v1099_v10 = vadd.f32 %v3250_v57, %v4302_v58  ;;  %v4385_v57 = vmax.f32 %v1078_v2, 0.0  ;;  %vm1365_vm1 = vcmp.le.f32.partialorder %v4362_v1, 0.0 }
 0x21b   :  { %v1090_v3 = vpop.f32.mrf.mxu1 }
 0x21c   :  { %1123 = vperm.xlu0 %3580, %v776_v48   ;;  %v4329_v45 = vmax.f32 %v1099_v10, 0.0  ;;  %v1091_v48 = vadd.f32 %v1090_v3, %v4316_v37  ;;  %v1067_v3 = vadd.f32 %v4282_v17, %v4392_v43  ;;  %v4397_v10 = vmax.f32 %v1075_v26, 0.0  ;;  %v4416_v17 = vld [vmem:[%s5166_s13 + $0x20] sm:$0xff] }
 0x21d   :  { %v3251_v40 = vpop.f32.mrf.mxu1  ;;  %vm1363_vm3 = vcmp.le.f32.partialorder %v4385_v57, 0.0 }
 0x21e   :  { %v1102_v33 = vadd.f32 %v3251_v40, %v4308_v16  ;;  %v4352_v61 = vmax.f32 %v1091_v48, 0.0  ;;  %vm1368_vm14 = vcmp.le.f32.partialorder %v4329_v45, 0.0  ;;  %v4407_v40 = vmax.f32 %v1070_v52, 0.0 }
 0x21f   :  { %v1093_v20 = vpop.f32.mrf.mxu1  ;;  %v1059_v48 = vadd.f32 %v4289_v19, %v4416_v17  ;;  %vm1362_vm4 = vcmp.le.f32.partialorder %v4397_v10, 0.0  ;;  %v4440_v19 = vld [vmem:[%s5166_s13 + $0x10] sm:$0xff] }
 0x220   :  { %v4332_v49 = vmax.f32 %v1102_v33, 0.0  ;;  %v1094_v50 = vadd.f32 %v1093_v20, %v4321_v44  ;;  %vm1366_vm0 = vcmp.le.f32.partialorder %v4352_v61, 0.0  ;;  %v1062_v33 = vadd.f32 %v4293_v9, %v4404_v63  ;;  %v4428_v9 = vld [vmem:[%s5166_s13 + $0x18] sm:$0xff] }
 0x221   :  { %v4419_v20 = vmax.f32 %v1067_v3, 0.0  ;;  %vm1361_vm5 = vcmp.le.f32.partialorder %v4407_v40, 0.0  ;;  %v1051_v60 = vadd.f32 %v4274_v8, %v4440_v19  ;;  %v4445_v2 = vmax.f32 %v1059_v48, 0.0  ;;  %v4464_v8 = vld [vmem:[%s5166_s13] sm:$0xff]  ;;  %v4478_v48 = vpop.f32.mrf.mxu0 }
 0x222   :  { %v4342_v56 = vmax.f32 %v1094_v50, 0.0  ;;  %vm1369_vm13 = vcmp.le.f32.partialorder %v4332_v49, 0.0  ;;  %v1054_v50 = vadd.f32 %v4278_v12, %v4428_v9  ;;  %v4433_v55 = vmax.f32 %v1062_v33, 0.0  ;;  %v4452_v12 = vld [vmem:[%s5166_s13 + $0x8] sm:$0xff] }
 0x223   :  { %3276 = vmatprep.subr.msk.mxu1 %vm1369_vm13, %v5185_v6  ;;  %vm1360_vm6 = vcmp.le.f32.partialorder %v4419_v20, 0.0  ;;  %v1046_v52 = vadd.f32 %v4280_v13, %v4452_v12  ;;  %v4467_v3 = vmax.f32 %v1051_v60, 0.0  ;;  %v1043_v33 = vadd.f32 %v4276_v11, %v4464_v8  ;;  %v4488_v11 = vpop.f32.mrf.mxu0 }
 0x224   :  { %3277 = vmatpush3.msk.msra.mxu1 %vm1369_vm13, %v5185_v6  ;;  %vm1367_vm15 = vcmp.le.f32.partialorder %v4342_v56, 0.0  ;;  %v4455_v26 = vmax.f32 %v1054_v50, 0.0  ;;  %vm1359_vm7 = vcmp.le.f32.partialorder %v4433_v55, 0.0  ;;  %vm1358_vm8 = vcmp.le.f32.partialorder %v4445_v2, 0.0 }
 0x225   :  { %3278 = vmatprep.subr.msk.mxu1 %vm1368_vm14, %v5185_v6  ;;  %v4474_v13 = vmax.f32 %v1046_v52, 0.0  ;;  %v4481_v50 = vmax.f32 %v1043_v33, 0.0  ;;  %vm1356_vm12 = vcmp.le.f32.partialorder %v4467_v3, 0.0  ;;  %v4497_v60 = vpop.f32.mrf.mxu0 }
 0x226   :  { %3279 = vmatpush3.msk.msra.mxu1 %vm1368_vm14, %v5185_v6  ;;  %vm1357_vm9 = vcmp.le.f32.partialorder %v4455_v26, 0.0 }
 0x227   :  { %3280 = vmatprep.subr.msk.mxu1 %vm1367_vm15, %v5185_v6  ;;  %vm1355_vm13 = vcmp.le.f32.partialorder %v4474_v13, 0.0  ;;  %vm1354_vm14 = vcmp.le.f32.partialorder %v4481_v50, 0.0  ;;  %v4509_v52 = vpop.f32.mrf.mxu0 }
 0x228   :  { %3281 = vmatpush3.msk.msra.mxu1 %vm1367_vm15, %v5185_v6  ;;  %vm434_vm15 = vcmp.eq.s32.totalorder %v4287_v18, %v4008_v24  ;;  %v1892_v24 = vld [vmem:[%s5158_s5 + $0x78] sm:$0xff] }
 0x229   :  { %3282 = vmatprep.subr.msk.mxu1 %vm1366_vm0, %v5185_v6  ;;  %v4523_v33 = vpop.f32.mrf.mxu0 }
 0x22a   :  { %3283 = vmatpush3.msk.msra.mxu1 %vm1366_vm0, %v5185_v6  ;;  %vm435_vm0 = vcmp.eq.s32.totalorder %v4287_v18, %v4022_v27  ;;  %v1891_v27 = vld [vmem:[%s5158_s5 + $0x70] sm:$0xff] }
 0x22b   :  { %3284 = vmatprep.subr.msk.mxu1 %vm1365_vm1, %v5185_v6  ;;  %v4537_v51 = vpop.f32.mrf.mxu0 }
 0x22c   :  { %3285 = vmatpush3.msk.msra.mxu1 %vm1365_vm1, %v5185_v6  ;;  %vm436_vm1 = vcmp.eq.s32.totalorder %v4287_v18, %v4028_v28 }
 0x22d   :  { %3286 = vmatprep.subr.msk.mxu1 %vm1364_vm2, %v5185_v6  ;;  %v3219_v46 = vpop.f32.mrf.mxu0 }
 0x22e   :  { %3287 = vmatpush3.msk.msra.mxu1 %vm1364_vm2, %v5185_v6  ;;  %vm437_vm2 = vcmp.eq.s32.totalorder %v4287_v18, %v4042_v31 }
 0x22f   :  { %3288 = vmatprep.subr.msk.mxu1 %vm1363_vm3, %v5185_v6  ;;  %v4547_v38 = vpop.f32.mrf.mxu0 }
 0x230   :  { %3289 = vmatpush3.msk.msra.mxu1 %vm1363_vm3, %v5185_v6  ;;  %vm438_vm3 = vcmp.eq.s32.totalorder %v4287_v18, %v4047_v32 }
 0x231   :  { %3290 = vmatprep.subr.msk.mxu1 %vm1362_vm4, %v5185_v6  ;;  %v3222_v53 = vpop.f32.mrf.mxu0 }
 0x232   :  { %3291 = vmatpush3.msk.msra.mxu1 %vm1362_vm4, %v5185_v6  ;;  %vm439_vm4 = vcmp.eq.s32.totalorder %v4287_v18, %v4060_v35  ;;  %v1889_v18 = vld [vmem:[%s5158_s5 + $0x60] sm:$0xff] }
 0x233   :  { %3292 = vmatprep.subr.msk.mxu1 %vm1361_vm5, %v5185_v6  ;;  %v961_v39 = vpop.f32.mrf.mxu0 }
 0x234   :  { %3293 = vmatpush3.msk.msra.mxu1 %vm1361_vm5, %v5185_v6  ;;  %vm1417_vm5 = vcmp.gt.f32.partialorder %v4332_v49, 0.0 }
 0x235   :  { %3294 = vmatprep.subr.msk.mxu1 %vm1360_vm6, %v5185_v6  ;;  %v3223_v62 = vpop.f32.mrf.mxu0 }
 0x236   :  { %3295 = vmatpush3.msk.msra.mxu1 %vm1360_vm6, %v5185_v6  ;;  %vm1416_vm6 = vcmp.gt.f32.partialorder %v4329_v45, 0.0 }
 0x237   :  { %3296 = vmatprep.subr.msk.mxu1 %vm1359_vm7, %v5185_v6  ;;  %v964_v41 = vpop.f32.mrf.mxu0 }
 0x238   :  { %3297 = vmatpush3.msk.msra.mxu1 %vm1359_vm7, %v5185_v6  ;;  %vm1415_vm7 = vcmp.gt.f32.partialorder %v4342_v56, 0.0 }
 0x239   :  { %3298 = vmatprep.subr.msk.mxu1 %vm1358_vm8, %v5185_v6  ;;  %v3226_v4 = vpop.f32.mrf.mxu0 }
 0x23a   :  { %3299 = vmatpush3.msk.msra.mxu1 %vm1358_vm8, %v5185_v6  ;;  %v986_v15 = vadd.f32 %v3226_v4, %v4302_v58  ;;  %v970_v4 = vadd.f32 %v3222_v53, %v4348_v59  ;;  %vm1414_vm8 = vcmp.gt.f32.partialorder %v4352_v61, 0.0 }
 0x23b   :  { %3300 = vmatprep.subr.msk.mxu1 %vm1357_vm9, %v5185_v6  ;;  %v977_v42 = vpop.f32.mrf.mxu0 }
 0x23c   :  { %3301 = vmatpush3.msk.msra.mxu1 %vm1357_vm9, %v5185_v6  ;;  %v978_v30 = vadd.f32 %v977_v42, %v4316_v37  ;;  %v1006_v36 = vmax.f32 %v986_v15, 0.0  ;;  %vm1413_vm9 = vcmp.gt.f32.partialorder %v4362_v1, 0.0 }
 0x23d   :  { %3302 = vmatprep.subr.msk.mxu1 %vm1356_vm12, %v5185_v6  ;;  %v3227_v22 = vpop.f32.mrf.mxu0 }
 0x23e   :  { %3303 = vmatpush3.msk.msra.mxu1 %vm1356_vm12, %v5185_v6  ;;  %v989_v25 = vadd.f32 %v3227_v22, %v4308_v16  ;;  %v973_v22 = vadd.f32 %v3223_v62, %v4339_v54  ;;  %v1004_v58 = vmax.f32 %v978_v30, 0.0  ;;  %vm1412_vm12 = vcmp.gt.f32.partialorder %v4373_v7, 0.0 }
 0x23f   :  { %3304 = vmatprep.subr.msk.mxu1 %vm1355_vm13, %v5185_v6  ;;  %v980_v21 = vpop.f32.mrf.mxu0 }
 0x240   :  { %3305 = vmatpush3.msk.msra.mxu1 %vm1355_vm13, %v5185_v6  ;;  %v981_v34 = vadd.f32 %v980_v21, %v4321_v44  ;;  %vm1411_vm13 = vcmp.gt.f32.partialorder %v4385_v57, 0.0 }
 0x241   :  { %3306 = vmatprep.subr.msk.mxu1 %vm1354_vm14, %v5185_v6 }
 0x242   :  { %3307 = vmatpush3.msk.msra.mxu1 %vm1354_vm14, %v5185_v6  ;;  %v1005_v42 = vmax.f32 %v981_v34, 0.0  ;;  %vm1410_vm14 = vcmp.gt.f32.partialorder %v4397_v10, 0.0 }
 0x243   :  { %3309 = vmatmul.mubr.msk.f32.vlgmr.msra.gmra.mxu1 %vm433_vm11, %v5185_v6 }
 0x244   :  { %3311 = vmatprep.mubr.msk.f32.mxu1 %vm434_vm15, %v5185_v6 }
 0x247   :  { %3312 = vmatmul.mubr.msk.f32.gmra.mxu1 %vm435_vm0, %v5185_v6 }
 0x248   :  { %3314 = vmatprep.mubr.msk.f32.mxu1 %vm436_vm1, %v5185_v6 }
 0x24b   :  { %3315 = vmatmul.mubr.msk.f32.gmra.mxu1 %vm437_vm2, %v5185_v6 }
 0x24c   :  { %3317 = vmatprep.mubr.msk.f32.mxu1 %vm438_vm3, %v5185_v6 }
 0x24f   :  { %3318 = vmatmul.mubr.msk.f32.gmra.mxu1 %vm439_vm4, %v5185_v6 }
 0x250   :  { %3396 = vmatprep.mubr.msk.f32.mxu1 %vm432_vm10, %v5185_v6  ;;  %v1007_v6 = vmax.f32 %v989_v25, 0.0 }
 0x279   :  { %v1199_v29 = vpop.permute.xlu1 %1198 }
 0x27a   :  { %v1353_v23 = vmul.f32 %v1199_v29, %v4332_v49  ;;  %v1216_v35 = vmul.f32 %v1199_v29, %v1007_v6  ;;  %v962_v29 = vadd.f32 %v961_v39, %v4370_v5  ;;  %v954_v39 = vadd.f32 %v4523_v33, %v4392_v43 }
 0x27b   :  { %v1194_v14 = vpop.permute.xlu0 %1193  ;;  %v957_v5 = vadd.f32 %v3219_v46, %v4381_v47  ;;  %v946_v47 = vadd.f32 %v4537_v51, %v4416_v17 }
 0x27c   :  { %v1433_v32 = vmax.f32 %v1353_v23, 1e-30  ;;  %v1215_v31 = vmul.f32 %v1194_v14, %v1006_v36  ;;  %v1352_v28 = vmul.f32 %v1194_v14, %v4329_v45  ;;  %v1002_v14 = vmax.f32 %v970_v4, 0.0 }
 0x27d   :  { %v1189_v16 = vpop.permute.xlu1 %1188  ;;  %v1003_v36 = vmax.f32 %v973_v22, 0.0  ;;  %v1000_v22 = vmax.f32 %v962_v29, 0.0  ;;  %v998_v46 = vmax.f32 %v954_v39, 0.0  ;;  %v999_v33 = vmax.f32 %v957_v5, 0.0 }
 0x27e   :  { %3598 = vlog2.f32 %v1433_v32  ;;  %v1224_v15 = vpack.c.bf16 %v1216_v35, %v1215_v31  ;;  %v1432_v25 = vmax.f32 %v1352_v28, 1e-30  ;;  %v1351_v21 = vmul.f32 %v1189_v16, %v4342_v56 }
 0x27f   :  { %v1184_v37 = vpop.permute.xlu0 %1183  ;;  %v1214_v44 = vmul.f32 %v1189_v16, %v1005_v42  ;;  %v965_v32 = vadd.f32 %v964_v41, %v4359_v0  ;;  %v4568_v42 = vadd.f32 %v4478_v48, %v4440_v19  ;;  %v949_v19 = vadd.f32 %v4547_v38, %v4404_v63 }
 0x280   :  { %3600 = vlog2.f32 %v1432_v25  ;;  %v1213_v6 = vmul.f32 %v1184_v37, %v1004_v58  ;;  %v1350_v23 = vmul.f32 %v1184_v37, %v4352_v61  ;;  %3252 = vmatprep.subr.bf16.mxu0 %v1224_v15  ;;  %v1431_v53 = vmax.f32 %v1351_v21, 1e-30 }
 0x281   :  { %v1179_v30 = vpop.permute.xlu1 %1178  ;;  %3253 = vmatpush3.bf16.msra.mxu0 %v1224_v15  ;;  %v1001_v0 = vmax.f32 %v965_v32, 0.0  ;;  %v996_v38 = vmax.f32 %v946_v47, 0.0 }
 0x282   :  { %v1223_v31 = vpack.c.bf16 %v1214_v44, %v1213_v6  ;;  %v1430_v28 = vmax.f32 %v1350_v23, 1e-30  ;;  %v1349_v35 = vmul.f32 %v1179_v30, %v4362_v1  ;;  %3602 = vlog2.f32 %v1431_v53 }
 0x283   :  { %v1212_v34 = vmul.f32 %v1179_v30, %v1003_v36  ;;  %v1174_v62 = vpop.permute.xlu0 %1173  ;;  %v941_v36 = vadd.f32 %v4497_v60, %v4428_v9 }
 0x284   :  { %3604 = vlog2.f32 %v1430_v28  ;;  %v1429_v54 = vmax.f32 %v1349_v35, 1e-30  ;;  %v1211_v59 = vmul.f32 %v1174_v62, %v1002_v14  ;;  %v1348_v4 = vmul.f32 %v1174_v62, %v4373_v7  ;;  %3254 = vmatprep.subr.bf16.mxu0 %v1223_v31 }
 0x285   :  { %v1169_v41 = vpop.permute.xlu1 %1168  ;;  %3255 = vmatpush3.bf16.msra.mxu0 %v1223_v31  ;;  %v994_v28 = vmax.f32 %v4568_v42, 0.0  ;;  %v930_v62 = vadd.f32 %v4488_v11, %v4464_v8  ;;  %v995_v5 = vmax.f32 %v941_v36, 0.0 }
 0x286   :  { %3606 = vlog2.f32 %v1429_v54  ;;  %v1222_v58 = vpack.c.bf16 %v1212_v34, %v1211_v59  ;;  %v1428_v16 = vmax.f32 %v1348_v4, 1e-30  ;;  %v1347_v15 = vmul.f32 %v1169_v41, %v4385_v57 }
 0x287   :  { %v1164_v25 = vpop.permute.xlu0 %1163  ;;  %v1210_v21 = vmul.f32 %v1169_v41, %v1001_v0  ;;  %v997_v34 = vmax.f32 %v949_v19, 0.0  ;;  %v5221_v57 = vmov 1.0  }
 0x288   :  { %3608 = vlog2.f32 %v1428_v16  ;;  %v1209_v37 = vmul.f32 %v1164_v25, %v1000_v22  ;;  %v1346_v43 = vmul.f32 %v1164_v25, %v4397_v10  ;;  %3256 = vmatprep.subr.bf16.mxu0 %v1222_v58  ;;  %v1427_v44 = vmax.f32 %v1347_v15, 1e-30 }
 0x289   :  { %v1159_v6 = vpop.permute.xlu1 %1158  ;;  %3257 = vmatpush3.bf16.msra.mxu0 %v1222_v58  ;;  %v933_v58 = vadd.f32 %v4509_v52, %v4452_v12  ;;  %v5222_v10 = vmov 1.0|1.0  }
 0x28a   :  { %v1221_v48 = vpack.c.bf16 %v1210_v21, %v1209_v37  ;;  %v1426_v23 = vmax.f32 %v1346_v43, 1e-30  ;;  %v1345_v14 = vmul.f32 %v1159_v6, %v4407_v40  ;;  %3610 = vlog2.f32 %v1427_v44 }
 0x28b   :  { %v3599_v29 = vpop.eup %3598  ;;  %v1208_v53 = vmul.f32 %v1159_v6, %v999_v33  ;;  %v1154_v30 = vpop.permute.xlu0 %1153  ;;  %v992_v33 = vmax.f32 %v930_v62, 0.0  ;;  %v993_v44 = vmax.f32 %v933_v58, 0.0 }
 0x28c   :  { %v1465_v32 = vmul.f32 0.6931472, %v3599_v29  ;;  %3612 = vlog2.f32 %v1426_v23  ;;  %v1425_v51 = vmax.f32 %v1345_v14, 1e-30  ;;  %v1207_v17 = vmul.f32 %v1154_v30, %v998_v46  ;;  %3258 = vmatprep.subr.bf16.mxu0 %v1221_v48 }
 0x28d   :  { %v3601_v31 = vpop.eup %3600  ;;  %v1344_v63 = vmul.f32 %v1154_v30, %v4419_v20  ;;  %v1149_v35 = vpop.permute.xlu1 %1148  ;;  %3259 = vmatpush3.bf16.msra.mxu0 %v1221_v48 }
 0x28e   :  { %v1463_v9 = vmul.f32 0.6931472, %v3601_v31  ;;  %3614 = vlog2.f32 %v1425_v51  ;;  %v1220_v60 = vpack.c.bf16 %v1208_v53, %v1207_v17  ;;  %3364 = vmatprep.subr.msk.mxu1 %vm1417_vm5, %v1465_v32  ;;  %v1343_v59 = vmul.f32 %v1149_v35, %v4433_v55 }
 0x28f   :  { %v1424_v54 = vmax.f32 %v1344_v63, 1e-30  ;;  %v1144_v4 = vpop.permute.xlu0 %1143  ;;  %3365 = vmatpush3.msk.msra.mxu1 %vm1417_vm5, %v1465_v32  ;;  %v3603_v39 = vpop.eup %3602  ;;  %v1206_v22 = vmul.f32 %v1149_v35, %v997_v34  ;;  %vm2726_vm5 = vmpackc.low %vm435_vm0, %vm434_vm15 }
 0x290   :  { %v1205_v41 = vmul.f32 %v1144_v4, %v996_v38  ;;  %v1342_v49 = vmul.f32 %v1144_v4, %v4445_v2  ;;  %3260 = vmatprep.subr.bf16.mxu0 %v1220_v60  ;;  %3366 = vmatprep.subr.msk.mxu1 %vm1416_vm6, %v1463_v9  ;;  %v1461_v8 = vmul.f32 0.6931472, %v3603_v39  ;;  %v1423_v11 = vmax.f32 %v1343_v59, 1e-30 }
 0x291   :  { %v3605_v0 = vpop.eup %3604  ;;  %3616 = vlog2.f32 %v1424_v54  ;;  %v1139_v16 = vpop.permute.xlu1 %1138  ;;  %3261 = vmatpush3.bf16.msra.mxu0 %v1220_v60  ;;  %3367 = vmatpush3.msk.msra.mxu1 %vm1416_vm6, %v1463_v9  ;;  %vm1409_vm6 = vcmp.gt.f32.partialorder %v4407_v40, 0.0 }
 0x292   :  { %v1459_v42 = vmul.f32 0.6931472, %v3605_v0  ;;  %v1219_v45 = vpack.c.bf16 %v1206_v22, %v1205_v41  ;;  %v1422_v15 = vmax.f32 %v1342_v49, 1e-30  ;;  %3618 = vlog2.f32 %v1423_v11  ;;  %3368 = vmatprep.subr.msk.mxu1 %vm1415_vm7, %v1461_v8  ;;  %v1890_v41 = vld [vmem:[%s5158_s5 + $0x68] sm:$0xff]  ;;  %v1888_v49 = vld [vmem:[%s5158_s5 + $0x58] sm:$0xff] }
 0x293   :  { %v3607_v25 = vpop.eup %3606  ;;  %v1204_v21 = vmul.f32 %v1139_v16, %v995_v5  ;;  %v1341_v37 = vmul.f32 %v1139_v16, %v4455_v26  ;;  %v1134_v43 = vpop.permute.xlu0 %1133  ;;  %3369 = vmatpush3.msk.msra.mxu1 %vm1415_vm7, %v1461_v8  ;;  %vm1408_vm7 = vcmp.gt.f32.partialorder %v4419_v20, 0.0  ;;  %v1887_v0 = vld [vmem:[%s5158_s5 + $0x50] sm:$0xff]  ;;  %v5229_v11 = vld [vmem:[#allocation20_spill] sm:$0xff]  ;;  %v1880_v22 = vld [vmem:[%s5158_s5 + $0x18] sm:$0xff] }
 0x294   :  { %v1457_v12 = vmul.f32 0.6931472, %v3607_v25  ;;  %3620 = vlog2.f32 %v1422_v15  ;;  %v1203_v52 = vmul.f32 %v1134_v43, %v994_v28  ;;  %v1340_v46 = vmul.f32 %v1134_v43, %v4467_v3  ;;  %3262 = vmatprep.subr.bf16.mxu0 %v1219_v45  ;;  %3370 = vmatprep.subr.msk.mxu1 %vm1414_vm8, %v1459_v42  ;;  %v5232_v25 = vld [vmem:[#allocation19_spill] sm:$0xff]  ;;  %v5234_v43 = vld [vmem:[#allocation17_spill] sm:$0xff] }
 0x295   :  { %v3609_v47 = vpop.eup %3608  ;;  %v1421_v56 = vmax.f32 %v1341_v37, 1e-30  ;;  %v1129_v6 = vpop.permute.xlu1 %1128  ;;  %3263 = vmatpush3.bf16.msra.mxu0 %v1219_v45  ;;  %3371 = vmatpush3.msk.msra.mxu1 %vm1414_vm8, %v1459_v42  ;;  %vm1407_vm8 = vcmp.gt.f32.partialorder %v4433_v55, 0.0  ;;  %v5230_v42 = vld [vmem:[#allocation21_spill] sm:$0xff]  ;;  %v5231_v45 = vld [vmem:[#allocation18_spill] sm:$0xff]  ;;  %v5233_v37 = vld [vmem:[#allocation15_spill] sm:$0xff] }
 0x296   :  { %v1455_v19 = vmul.f32 0.6931472, %v3609_v47  ;;  %v1218_v48 = vpack.c.bf16 %v1204_v21, %v1203_v52  ;;  %v1420_v23 = vmax.f32 %v1340_v46, 1e-30  ;;  %v1339_v14 = vmul.f32 %v1129_v6, %v4474_v13  ;;  %3372 = vmatprep.subr.msk.mxu1 %vm1413_vm9, %v1457_v12  ;;  %v5235_v52 = vld [vmem:[#allocation14_spill] sm:$0xff]  ;;  %v5236_v47 = vld [vmem:[#allocation16_spill] sm:$0xff] }
 0x297   :  { %3622 = vlog2.f32 %v1421_v56  ;;  %v1124_v29 = vpop.permute.xlu0 %1123  ;;  %v3611_v36 = vpop.eup %3610  ;;  %v1202_v53 = vmul.f32 %v1129_v6, %v993_v44  ;;  %3373 = vmatpush3.msk.msra.mxu1 %vm1413_vm9, %v1457_v12  ;;  %vm1406_vm9 = vcmp.gt.f32.partialorder %v4445_v2, 0.0 }
 0x298   :  { %3624 = vlog2.f32 %v1420_v23  ;;  %v1201_v30 = vmul.f32 %v1124_v29, %v992_v33  ;;  %v1338_v32 = vmul.f32 %v1124_v29, %v4481_v50  ;;  %3264 = vmatprep.subr.bf16.mxu0 %v1218_v48  ;;  %v1453_v61 = vmul.f32 0.6931472, %v3611_v36  ;;  %3374 = vmatprep.subr.msk.mxu1 %vm1412_vm12, %v1455_v19  ;;  %v1886_v36 = vld [vmem:[%s5158_s5 + $0x48] sm:$0xff] }
 0x299   :  { %v3613_v51 = vpop.eup %3612  ;;  %v1419_v17 = vmax.f32 %v1339_v14, 1e-30  ;;  %3265 = vmatpush3.bf16.msra.mxu0 %v1218_v48  ;;  %3375 = vmatpush3.msk.msra.mxu1 %vm1412_vm12, %v1455_v19  ;;  %vm1405_vm12 = vcmp.gt.f32.partialorder %v4455_v26, 0.0 }
 0x29a   :  { %v1451_v1 = vmul.f32 0.6931472, %v3613_v51  ;;  %v1217_v31 = vpack.c.bf16 %v1202_v53, %v1201_v30  ;;  %v1418_v28 = vmax.f32 %v1338_v32, 1e-30  ;;  %3376 = vmatprep.subr.msk.mxu1 %vm1411_vm13, %v1453_v61 }
 0x29b   :  { %v3615_v38 = vpop.eup %3614  ;;  %3626 = vlog2.f32 %v1419_v17  ;;  %3377 = vmatpush3.msk.msra.mxu1 %vm1411_vm13, %v1453_v61  ;;  %vm1404_vm13 = vcmp.gt.f32.partialorder %v4467_v3, 0.0  ;;  %v1885_v17 = vld [vmem:[%s5158_s5 + $0x40] sm:$0xff] }
 0x29c   :  { %v1449_v63 = vmul.f32 0.6931472, %v3615_v38  ;;  %3628 = vlog2.f32 %v1418_v28  ;;  %3266 = vmatprep.subr.bf16.mxu0 %v1217_v31  ;;  %3378 = vmatprep.subr.msk.mxu1 %vm1410_vm14, %v1451_v1  ;;  %v1881_v3 = vld [vmem:[%s5158_s5 + $0x20] sm:$0xff] }
 0x29d   :  { %3267 = vmatpush3.bf16.msra.mxu0 %v1217_v31  ;;  %3379 = vmatpush3.msk.msra.mxu1 %vm1410_vm14, %v1451_v1  ;;  %vm1403_vm14 = vcmp.gt.f32.partialorder %v4474_v13, 0.0  ;;  %3630 = vlog2.f32 %v5229_v11  ;;  %v1878_v11 = vld [vmem:[%s5158_s5 + $0x8] sm:$0xff] }
 0x29e   :  { %v3617_v7 = vpop.eup %3616  ;;  %3320 = vmatprep.subr.mxu0 %v5221_v57  ;;  %3380 = vmatprep.subr.msk.mxu1 %vm1409_vm6, %v1449_v63  ;;  %3632 = vlog2.f32 %v5230_v42  ;;  %v1877_v42 = vld [vmem:[%s5158_s5] sm:$0xff] }
 0x29f   :  { %v1447_v35 = vmul.f32 0.6931472, %v3617_v7  ;;  %v3619_v34 = vpop.eup %3618  ;;  %3381 = vmatpush3.msk.msra.mxu1 %vm1409_vm6, %v1449_v63  ;;  %vm2728_vm6 = vmpackc.low %vm437_vm2, %vm436_vm1  ;;  %3634 = vlog2.f32 %v5231_v45  ;;  %v1884_v7 = vld [vmem:[%s5158_s5 + $0x38] sm:$0xff]  ;;  %v5237_v45 = vld [vmem:[#allocation25_spill] sm:$0xff] }
 0x2a0   :  { %3269 = vmatmul.mubr.msk.bf16.vlgmr.msra.gmra.mxu0 %vm2726_vm5, %v5222_v10  ;;  %v1445_v60 = vmul.f32 0.6931472, %v3619_v34  ;;  %vm1402_vm5 = vcmp.gt.f32.partialorder %v4481_v50, 0.0  ;;  %3636 = vlog2.f32 %v5232_v25  ;;  %v4804_v25 = vld [vmem:[%s5161_s8 + $0x78] sm:$0xff] }
 0x2a1   :  { %v3621_v9 = vpop.eup %3620  ;;  %3382 = vmatprep.subr.msk.mxu1 %vm1408_vm7, %v1447_v35  ;;  %3321 = vmatpush3.msra.mxu0 %v5221_v57  ;;  %3638 = vlog2.f32 %v5233_v37  ;;  %v5238_v37 = vld [vmem:[#allocation29_spill] sm:$0xff] }
 0x2a2   :  { %v1443_v62 = vmul.f32 0.6931472, %v3621_v9  ;;  %3383 = vmatpush3.msk.msra.mxu1 %vm1408_vm7, %v1447_v35  ;;  %3322 = vmatprep.subr.mxu0 %v5221_v57  ;;  %vm2730_vm7 = vmpackc.low %vm439_vm4, %vm438_vm3  ;;  %3640 = vlog2.f32 %v5234_v43  ;;  %v5239_v43 = vld [vmem:[#allocation24_spill] sm:$0xff] }
 0x2a3   :  { %3384 = vmatprep.subr.msk.mxu1 %vm1407_vm8, %v1445_v60  ;;  %3323 = vmatpush3.msra.mxu0 %v5221_v57  ;;  %3642 = vlog2.f32 %v5235_v52  ;;  %v5240_v52 = vld [vmem:[#allocation28_spill] sm:$0xff] }
 0x2a4   :  { %v3623_v40 = vpop.eup %3622  ;;  %3385 = vmatpush3.msk.msra.mxu1 %vm1407_vm8, %v1445_v60  ;;  %3324 = vmatprep.subr.mxu0 %v5221_v57  ;;  %3644 = vlog2.f32 %v5236_v47  ;;  %v1883_v60 = vld [vmem:[%s5158_s5 + $0x30] sm:$0xff]  ;;  %v5242_v47 = vld [vmem:[#allocation27_spill] sm:$0xff] }
 0x2a5   :  { %v3625_v20 = vpop.eup %3624  ;;  %v1441_v54 = vmul.f32 0.6931472, %v3623_v40  ;;  %3386 = vmatprep.subr.msk.mxu1 %vm1406_vm9, %v1443_v62  ;;  %3325 = vmatpush3.msra.mxu0 %v5221_v57 }
 0x2a6   :  { %v1439_v59 = vmul.f32 0.6931472, %v3625_v20  ;;  %3387 = vmatpush3.msk.msra.mxu1 %vm1406_vm9, %v1443_v62  ;;  %3326 = vmatprep.subr.mxu0 %v5221_v57 }
 0x2a7   :  { %3388 = vmatprep.subr.msk.mxu1 %vm1405_vm12, %v1441_v54  ;;  %3327 = vmatpush3.msra.mxu0 %v5221_v57 }
 0x2a8   :  { %v3627_v55 = vpop.eup %3626  ;;  %3389 = vmatpush3.msk.msra.mxu1 %vm1405_vm12, %v1441_v54  ;;  %3328 = vmatprep.subr.mxu0 %v5221_v57 }
 0x2a9   :  { %v3629_v2 = vpop.eup %3628  ;;  %v1437_v4 = vmul.f32 0.6931472, %v3627_v55  ;;  %3390 = vmatprep.subr.msk.mxu1 %vm1404_vm13, %v1439_v59  ;;  %3329 = vmatpush3.msra.mxu0 %v5221_v57  ;;  %v1882_v55 = vld [vmem:[%s5158_s5 + $0x28] sm:$0xff] }
 0x2aa   :  { %v1435_v39 = vmul.f32 0.6931472, %v3629_v2  ;;  %3391 = vmatpush3.msk.msra.mxu1 %vm1404_vm13, %v1439_v59  ;;  %3330 = vmatprep.subr.mxu0 %v5221_v57  ;;  %v3631_v46 = vpop.eup %3630 }
 0x2ab   :  { %3392 = vmatprep.subr.msk.mxu1 %vm1403_vm14, %v1437_v4  ;;  %3331 = vmatpush3.msra.mxu0 %v5221_v57  ;;  %v3633_v33 = vpop.eup %3632  ;;  %v632_v56 = vmul.f32 0.6931472, %v3631_v46  ;;  %v5241_v46 = vld [vmem:[#allocation23_spill] sm:$0xff] }
 0x2ac   :  { %3393 = vmatpush3.msk.msra.mxu1 %vm1403_vm14, %v1437_v4  ;;  %3332 = vmatprep.subr.mxu0 %v5221_v57  ;;  %v3635_v6 = vpop.eup %3634  ;;  %v630_v19 = vmul.f32 0.6931472, %v3633_v33  ;;  %v5243_v33 = vld [vmem:[#allocation22_spill] sm:$0xff] }
 0x2ad   :  { %3394 = vmatprep.subr.msk.mxu1 %vm1402_vm5, %v1435_v39  ;;  %3333 = vmatpush3.msra.mxu0 %v5221_v57  ;;  %v3637_v48 = vpop.eup %3636  ;;  %v646_v14 = vmul.f32 -0.5, %v632_v56  ;;  %v636_v29 = vmul.f32 0.6931472, %v3635_v6  ;;  %v5244_v56 = vld [vmem:[#allocation26_spill] sm:$0xff]  ;;  %v2020_v6 = vld [vmem:[%s5160_s7 + $0x78] sm:$0xff] }
 0x2ae   :  { %3395 = vmatpush3.msk.msra.mxu1 %vm1402_vm5, %v1435_v39  ;;  %3334 = vmatprep.subr.mxu0 %v5221_v57  ;;  %v3639_v53 = vpop.eup %3638  ;;  %v645_v51 = vmul.f32 -0.5, %v630_v19  ;;  %v634_v61 = vmul.f32 0.6931472, %v3637_v48  ;;  %v2019_v19 = vld [vmem:[%s5160_s7 + $0x70] sm:$0xff]  ;;  %v2018_v48 = vld [vmem:[%s5160_s7 + $0x68] sm:$0xff] }
 0x2af   :  { %3335 = vmatpush3.msra.mxu0 %v5221_v57  ;;  %3272 = vmatprep.mubr.msk.bf16.mxu0 %vm2728_vm6, %v5222_v10  ;;  %v3641_v1 = vpop.eup %3640  ;;  %v648_v38 = vmul.f32 -0.5, %v636_v29  ;;  %v640_v63 = vmul.f32 0.6931472, %v3639_v53  ;;  %v2016_v29 = vld [vmem:[%s5160_s7 + $0x58] sm:$0xff]  ;;  %v2014_v53 = vld [vmem:[%s5160_s7 + $0x48] sm:$0xff] }
 0x2b0   :  { %3336 = vmatprep.subr.mxu0 %v5221_v57  ;;  %3273 = vmatmul.mubr.msk.bf16.gmra.mxu0 %vm2730_vm7, %v5222_v10  ;;  %v647_v10 = vmul.f32 -0.5, %v634_v61  ;;  %v638_v9 = vmul.f32 0.6931472, %v3641_v1  ;;  %v2010_v61 = vld [vmem:[%s5160_s7 + $0x28] sm:$0xff]  ;;  %v2008_v1 = vld [vmem:[%s5160_s7 + $0x18] sm:$0xff] }
 0x2b1   :  { %3337 = vmatpush3.msra.mxu0 %v5221_v57  ;;  %3352 = vmatprep.mubr.msk.f32.mxu0 %vm432_vm10, %v5221_v57  ;;  %v650_v54 = vmul.f32 -0.5, %v640_v63 }
 0x2b2   :  { %3338 = vmatprep.subr.mxu0 %v5221_v57  ;;  %3397 = vmatmul.mubr.msk.f32.vlgmr.msra.gmra.mxu1 %vm433_vm11, %v5221_v57  ;;  %v649_v39 = vmul.f32 -0.5, %v638_v9 }
 0x2b3   :  { %3339 = vmatpush3.msra.mxu0 %v5221_v57  ;;  %3399 = vmatprep.mubr.msk.f32.mxu1 %vm434_vm15, %v5221_v57 }
 0x2b4   :  { %3340 = vmatprep.subr.mxu0 %v5221_v57  ;;  %3452 = vmatprep.subr.mxu1 %v2020_v6 }
 0x2b5   :  { %3341 = vmatpush3.msra.mxu0 %v5221_v57  ;;  %3453 = vmatpush3.msra.mxu1 %v2020_v6 }
 0x2b6   :  { %3342 = vmatprep.subr.mxu0 %v5221_v57  ;;  %3400 = vmatmul.mubr.msk.f32.gmra.mxu1 %vm435_vm0, %v5221_v57 }
 0x2b7   :  { %3343 = vmatpush3.msra.mxu0 %v5221_v57  ;;  %3402 = vmatprep.mubr.msk.f32.mxu1 %vm436_vm1, %v5221_v57 }
 0x2b8   :  { %3344 = vmatprep.subr.mxu0 %v5221_v57  ;;  %3454 = vmatprep.subr.mxu1 %v2019_v19 }
 0x2b9   :  { %3345 = vmatpush3.msra.mxu0 %v5221_v57  ;;  %3455 = vmatpush3.msra.mxu1 %v2019_v19  ;;  %v4869_v19 = vld [vmem:[%s5161_s8 + $0x70] sm:$0xff] }
 0x2ba   :  { %3346 = vmatprep.subr.mxu0 %v5221_v57  ;;  %3403 = vmatmul.mubr.msk.f32.gmra.mxu1 %vm437_vm2, %v5221_v57 }
 0x2bb   :  { %3347 = vmatpush3.msra.mxu0 %v5221_v57  ;;  %3405 = vmatprep.mubr.msk.f32.mxu1 %vm438_vm3, %v5221_v57 }
 0x2bc   :  { %3348 = vmatprep.subr.mxu0 %v5221_v57  ;;  %3456 = vmatprep.subr.mxu1 %v2018_v48 }
 0x2bd   :  { %3349 = vmatpush3.msra.mxu0 %v5221_v57  ;;  %3457 = vmatpush3.msra.mxu1 %v2018_v48  ;;  %v4876_v48 = vld [vmem:[%s5161_s8 + $0x68] sm:$0xff] }
 0x2be   :  { %3350 = vmatprep.subr.mxu0 %v5221_v57  ;;  %3406 = vmatmul.mubr.msk.f32.gmra.mxu1 %vm439_vm4, %v5221_v57 }
 0x2bf   :  { %3351 = vmatpush3.msra.mxu0 %v5221_v57 }
 0x2c0   :  { %3353 = vmatmul.mubr.msk.f32.vlgmr.msra.gmra.mxu0 %vm433_vm11, %v5221_v57  ;;  %3408 = vmatprep.subr.mxu0 %v1892_v24 }
 0x2c1   :  { %3355 = vmatprep.mubr.msk.f32.mxu0 %vm434_vm15, %v5221_v57  ;;  %3409 = vmatpush3.msra.mxu0 %v1892_v24 }
 0x2c2   :  { %3410 = vmatprep.subr.mxu0 %v1891_v27 }
 0x2c3   :  { %3411 = vmatpush3.msra.mxu0 %v1891_v27 }
 0x2c4   :  { %3356 = vmatmul.mubr.msk.f32.gmra.mxu0 %vm435_vm0, %v5221_v57  ;;  %3412 = vmatprep.subr.mxu0 %v1890_v41 }
 0x2c5   :  { %3358 = vmatprep.mubr.msk.f32.mxu0 %vm436_vm1, %v5221_v57  ;;  %3413 = vmatpush3.msra.mxu0 %v1890_v41 }
 0x2c6   :  { %3414 = vmatprep.subr.mxu0 %v1889_v18 }
 0x2c7   :  { %3415 = vmatpush3.msra.mxu0 %v1889_v18  ;;  %v1879_v18 = vld [vmem:[%s5158_s5 + $0x10] sm:$0xff] }
 0x2c8   :  { %3359 = vmatmul.mubr.msk.f32.gmra.mxu0 %vm437_vm2, %v5221_v57  ;;  %3416 = vmatprep.subr.mxu0 %v1888_v49 }
 0x2c9   :  { %3361 = vmatprep.mubr.msk.f32.mxu0 %vm438_vm3, %v5221_v57  ;;  %3417 = vmatpush3.msra.mxu0 %v1888_v49 }
 0x2ca   :  { %3418 = vmatprep.subr.mxu0 %v1887_v0 }
 0x2cb   :  { %3419 = vmatpush3.msra.mxu0 %v1887_v0 }
 0x2cc   :  { %3362 = vmatmul.mubr.msk.f32.gmra.mxu0 %vm439_vm4, %v5221_v57  ;;  %3420 = vmatprep.subr.mxu0 %v1886_v36  ;;  %v3643_v57 = vpop.eup %3642 }
 0x2cd   :  { %3421 = vmatpush3.msra.mxu0 %v1886_v36  ;;  %v3645_v62 = vpop.eup %3644  ;;  %v644_v59 = vmul.f32 0.6931472, %v3643_v57  ;;  %v2015_v36 = vld [vmem:[%s5160_s7 + $0x50] sm:$0xff] }
 0x2ce   :  { %3422 = vmatprep.subr.mxu0 %v1885_v17  ;;  %v642_v26 = vmul.f32 0.6931472, %v3645_v62 }
 0x2cf   :  { %3423 = vmatpush3.msra.mxu0 %v1885_v17  ;;  %v652_v50 = vmul.f32 -0.5, %v644_v59  ;;  %v2009_v17 = vld [vmem:[%s5160_s7 + $0x20] sm:$0xff] }
 0x2d0   :  { %3424 = vmatprep.subr.mxu0 %v1884_v7  ;;  %v651_v41 = vmul.f32 -0.5, %v642_v26 }
 0x2d1   :  { %3425 = vmatpush3.msra.mxu0 %v1884_v7 }
 0x2d2   :  { %3426 = vmatprep.subr.mxu0 %v1883_v60 }
 0x2d3   :  { %3427 = vmatpush3.msra.mxu0 %v1883_v60 }
 0x2d4   :  { %3428 = vmatprep.subr.mxu0 %v1882_v55 }
 0x2d5   :  { %3429 = vmatpush3.msra.mxu0 %v1882_v55 }
 0x2d6   :  { %3430 = vmatprep.subr.mxu0 %v1881_v3 }
 0x2d7   :  { %3431 = vmatpush3.msra.mxu0 %v1881_v3 }
 0x2d8   :  { %3432 = vmatprep.subr.mxu0 %v1880_v22 }
 0x2d9   :  { %3433 = vmatpush3.msra.mxu0 %v1880_v22 }
 0x2da   :  { %3434 = vmatprep.subr.mxu0 %v1879_v18 }
 0x2db   :  { %3435 = vmatpush3.msra.mxu0 %v1879_v18 }
 0x2dc   :  { %3436 = vmatprep.subr.mxu0 %v1878_v11 }
 0x2dd   :  { %3437 = vmatpush3.msra.mxu0 %v1878_v11 }
 0x2de   :  { %3438 = vmatprep.subr.mxu0 %v1877_v42 }
 0x2df   :  { %3439 = vmatpush3.msra.mxu0 %v1877_v42 }
 0x2e0   :  { %3496 = vmatprep.subr.mxu0 %v4804_v25 }
 0x360   :  { %v4746_v58 = vpop.f32.mrf.mxu0 }
 0x362   :  { %v4748_v8 = vpop.f32.mrf.mxu0 }
 0x364   :  { %v4751_v16 = vpop.f32.mrf.mxu0 }
 0x366   :  { %v4755_v15 = vpop.f32.mrf.mxu0 }
 0x370   :  { %v4758_v21 = vpop.f32.mrf.mxu0 }
 0x372   :  { %v4762_v12 = vpop.f32.mrf.mxu0 }
 0x374   :  { %v4766_v44 = vpop.f32.mrf.mxu0 }
 0x376   :  { %v4768_v23 = vpop.f32.mrf.mxu0 }
 0x380   :  { %v3354_v30 = vpop.f32.mrf.mxu0 }
 0x381   :  { %v1693_v32 = vmul.f32 %v3354_v30, %v646_v14  ;;  %v2017_v14 = vld [vmem:[%s5160_s7 + $0x60] sm:$0xff] }
 0x382   :  { %v1653_v31 = vpop.f32.mrf.mxu0  ;;  %3458 = vmatprep.subr.mxu1 %v2017_v14  ;;  %v2013_v30 = vld [vmem:[%s5160_s7 + $0x40] sm:$0xff] }
 0x383   :  { %v1692_v28 = vmul.f32 %v1653_v31, %v645_v51  ;;  %1707 = vperm.xlu1 %3581, %v1693_v32   ;;  %3459 = vmatpush3.msra.mxu1 %v2017_v14  ;;  %v2012_v32 = vld [vmem:[%s5160_s7 + $0x38] sm:$0xff]  ;;  %v2011_v51 = vld [vmem:[%s5160_s7 + $0x30] sm:$0xff] }
 0x384   :  { %v3357_v35 = vpop.f32.mrf.mxu0  ;;  %3460 = vmatprep.subr.mxu1 %v2016_v29  ;;  %v2007_v31 = vld [vmem:[%s5160_s7 + $0x10] sm:$0xff] }
 0x385   :  { %v1695_v34 = vmul.f32 %v3357_v35, %v648_v38  ;;  %1702 = vperm.xlu0 %3580, %v1692_v28   ;;  %3461 = vmatpush3.msra.mxu1 %v2016_v29  ;;  %v3310_v28 = vpop.f32.mrf.mxu1 }
 0x386   :  { %v1663_v40 = vpop.f32.mrf.mxu0  ;;  %3462 = vmatprep.subr.mxu1 %v2015_v36  ;;  %vm1846_vm11 = vcmp.gt.f32.partialorder %v3310_v28, 0.5 }
 0x387   :  { %v1694_v20 = vmul.f32 %v1663_v40, %v647_v10  ;;  %1717 = vperm.xlu1 %3581, %v1695_v34   ;;  %3463 = vmatpush3.msra.mxu1 %v2015_v36  ;;  %v1548_v38 = vpop.f32.mrf.mxu1  ;;  %vm2807_vm0 = vmneg %vm1846_vm11  ;;  %v4884_v36 = vld [vmem:[%s5161_s8 + $0x60] sm:$0xff] }
 0x388   :  { %v3360_v2 = vpop.f32.mrf.mxu0  ;;  %3464 = vmatprep.subr.mxu1 %v2014_v53  ;;  %vm1845_vm10 = vcmp.gt.f32.partialorder %v1548_v38, 0.5  ;;  %v4918_v38 = vld [vmem:[%s5161_s8 + $0x40] sm:$0xff] }
 0x389   :  { %v1697_v4 = vmul.f32 %v3360_v2, %v650_v54  ;;  %1712 = vperm.xlu0 %3580, %v1694_v20   ;;  %3465 = vmatpush3.msra.mxu1 %v2014_v53  ;;  %v4856_v63 = vpop.f32.mrf.mxu1  ;;  %vm2805_vm15 = vmneg %vm1845_vm10  ;;  %v4892_v53 = vld [vmem:[%s5161_s8 + $0x58] sm:$0xff] }
 0x38a   :  { %v1673_v13 = vpop.f32.mrf.mxu0  ;;  %3466 = vmatprep.subr.mxu1 %v2013_v30  ;;  %vm1848_vm2 = vcmp.gt.f32.partialorder %v4856_v63, 0.5  ;;  %v4933_v63 = vld [vmem:[%s5161_s8 + $0x30] sm:$0xff] }
 0x38b   :  { %v1696_v5 = vmul.f32 %v1673_v13, %v649_v39  ;;  %1727 = vperm.xlu1 %3581, %v1697_v4   ;;  %3467 = vmatpush3.msra.mxu1 %v2013_v30  ;;  %v1558_v7 = vpop.f32.mrf.mxu1  ;;  %vm2811_vm4 = vmneg %vm1848_vm2 }
 0x38c   :  { %v3363_v24 = vpop.f32.mrf.mxu0  ;;  %3468 = vmatprep.subr.mxu1 %v2012_v32  ;;  %vm1847_vm1 = vcmp.gt.f32.partialorder %v1558_v7, 0.5  ;;  %v4940_v7 = vld [vmem:[%s5161_s8 + $0x28] sm:$0xff] }
 0x38d   :  { %v1699_v27 = vmul.f32 %v3363_v24, %v652_v50  ;;  %1722 = vperm.xlu0 %3580, %v1696_v5   ;;  %3469 = vmatpush3.msra.mxu1 %v2012_v32  ;;  %v4858_v57 = vpop.f32.mrf.mxu1  ;;  %vm2809_vm3 = vmneg %vm1847_vm1 }
 0x38e   :  { %v1683_v49 = vpop.f32.mrf.mxu0  ;;  %3470 = vmatprep.subr.mxu1 %v2011_v51  ;;  %vm1850_vm9 = vcmp.gt.f32.partialorder %v4858_v57, 0.5 }
 0x38f   :  { %v1698_v0 = vmul.f32 %v1683_v49, %v651_v41  ;;  %1737 = vperm.xlu1 %3581, %v1699_v27   ;;  %3471 = vmatpush3.msra.mxu1 %v2011_v51  ;;  %v4860_v35 = vpop.f32.mrf.mxu1  ;;  %vm2815_vm13 = vmneg %vm1850_vm9  ;;  %v4900_v51 = vld [vmem:[%s5161_s8 + $0x50] sm:$0xff] }
 0x390   :  { %3472 = vmatprep.subr.mxu1 %v2010_v61  ;;  %vm1849_vm8 = vcmp.gt.f32.partialorder %v4860_v35, 0.5  ;;  %v4947_v35 = vld [vmem:[%s5161_s8 + $0x20] sm:$0xff] }
 0x391   :  { %1732 = vperm.xlu0 %3580, %v1698_v0   ;;  %3473 = vmatpush3.msra.mxu1 %v2010_v61  ;;  %v4862_v34 = vpop.f32.mrf.mxu1  ;;  %vm2813_vm12 = vmneg %vm1849_vm8 }
 0x392   :  { %3474 = vmatprep.subr.mxu1 %v2009_v17  ;;  %vm1852_vm5 = vcmp.gt.f32.partialorder %v4862_v34, 0.5  ;;  %v4954_v34 = vld [vmem:[%s5161_s8 + $0x18] sm:$0xff] }
 0x393   :  { %1312 = vperm.xlu1 %3581, %v5237_v45   ;;  %3475 = vmatpush3.msra.mxu1 %v2009_v17  ;;  %v4864_v10 = vpop.f32.mrf.mxu1  ;;  %v4908_v17 = vld [vmem:[%s5161_s8 + $0x48] sm:$0xff]  ;;  %vm2819_vm7 = vmneg %vm1852_vm5 }
 0x394   :  { %3476 = vmatprep.subr.mxu1 %v2008_v1  ;;  %vm1851_vm14 = vcmp.gt.f32.partialorder %v4864_v10, 0.5  ;;  %v4961_v10 = vld [vmem:[%s5161_s8 + $0x10] sm:$0xff] }
 0x395   :  { %1292 = vperm.xlu0 %3580, %v5238_v37   ;;  %3477 = vmatpush3.msra.mxu1 %v2008_v1  ;;  %v3398_v9 = vpop.f32.mrf.mxu1  ;;  %vm2817_vm6 = vmneg %vm1851_vm14 }
 0x396   :  { %3478 = vmatprep.subr.mxu1 %v2007_v31 }
 0x397   :  { %1317 = vperm.xlu1 %3581, %v5239_v43   ;;  %3479 = vmatpush3.msra.mxu1 %v2007_v31  ;;  %v1806_v60 = vpop.f32.mrf.mxu1 }
 0x399   :  { %1297 = vperm.xlu0 %3580, %v5240_v52   ;;  %v3401_v62 = vpop.f32.mrf.mxu1 }
 0x39b   :  { %1322 = vperm.xlu1 %3581, %v5241_v46   ;;  %v1816_v40 = vpop.f32.mrf.mxu1 }
 0x39d   :  { %1302 = vperm.xlu0 %3580, %v5242_v47   ;;  %v3404_v54 = vpop.f32.mrf.mxu1 }
 0x39f   :  { %1327 = vperm.xlu1 %3581, %v5243_v33   ;;  %v1826_v26 = vpop.f32.mrf.mxu1 }
 0x3a1   :  { %1307 = vperm.xlu0 %3580, %v5244_v56   ;;  %v3407_v27 = vpop.f32.mrf.mxu1 }
 0x3a3   :  { %v1836_v45 = vpop.f32.mrf.mxu1 }
 0x3fe   :  { %v1708_v20 = vpop.permute.xlu1 %1707 }
 0x3ff   :  { %v1812_v59 = vadd.f32 %v3398_v9, %v1708_v20 }
 0x400   :  { %v1703_v55 = vpop.permute.xlu0 %1702 }
 0x401   :  { %v1807_v2 = vadd.f32 %v1806_v60, %v1703_v55  ;;  %v1855_v4 = vmul.f32 1.442695, %v1812_v59  ;;  %v4968_v60 = vld [vmem:[%s5161_s8 + $0x8] sm:$0xff] }
 0x402   :  { %v1718_v39 = vpop.permute.xlu1 %1717 }
 0x403   :  { %v1853_v3 = vmul.f32 1.442695, %v1807_v2  ;;  %v1822_v13 = vadd.f32 %v3401_v62, %v1718_v39  ;;  %v4975_v62 = vld [vmem:[%s5161_s8] sm:$0xff] }
 0x404   :  { %v1713_v5 = vpop.permute.xlu0 %1712 }
 0x405   :  { %3646 = vpow2.f32 %v1853_v3  ;;  %v1817_v50 = vadd.f32 %v1816_v40, %v1713_v5  ;;  %v1859_v22 = vmul.f32 1.442695, %v1822_v13 }
 0x406   :  { %3648 = vpow2.f32 %v1855_v4  ;;  %v1728_v24 = vpop.permute.xlu1 %1727 }
 0x407   :  { %v1857_v41 = vmul.f32 1.442695, %v1817_v50  ;;  %v1832_v18 = vadd.f32 %v3404_v54, %v1728_v24 }
 0x408   :  { %v1723_v49 = vpop.permute.xlu0 %1722 }
 0x409   :  { %3650 = vpow2.f32 %v1857_v41  ;;  %v1827_v0 = vadd.f32 %v1826_v26, %v1723_v49  ;;  %v1863_v11 = vmul.f32 1.442695, %v1832_v18 }
 0x40a   :  { %3652 = vpow2.f32 %v1859_v22  ;;  %v1738_v42 = vpop.permute.xlu1 %1737 }
 0x40b   :  { %v1861_v37 = vmul.f32 1.442695, %v1827_v0  ;;  %v1842_v43 = vadd.f32 %v3407_v27, %v1738_v42 }
 0x40c   :  { %v1733_v52 = vpop.permute.xlu0 %1732 }
 0x40d   :  { %3654 = vpow2.f32 %v1861_v37  ;;  %v1837_v46 = vadd.f32 %v1836_v45, %v1733_v52  ;;  %v1867_v47 = vmul.f32 1.442695, %v1842_v43 }
 0x40e   :  { %3656 = vpow2.f32 %v1863_v11  ;;  %v1313_v41 = vpop.permute.xlu1 %1312 }
 0x40f   :  { %v1865_v33 = vmul.f32 1.442695, %v1837_v46  ;;  %v5036_v11 = vmul.f32 %v1313_v41, %v4762_v12 }
 0x410   :  { %v1293_v61 = vpop.permute.xlu0 %1292 }
 0x411   :  { %3658 = vpow2.f32 %v1865_v33  ;;  %v4912_v28 = vmul.f32 %v1293_v61, %v4748_v8  ;;  %v4926_v8 = vld [vmem:[%s5161_s8 + $0x38] sm:$0xff] }
 0x412   :  { %v3647_v56 = vpop.eup %3646  ;;  %3660 = vpow2.f32 %v1867_v47  ;;  %v1318_v12 = vpop.permute.xlu1 %1317 }
 0x413   :  { %v3649_v6 = vpop.eup %3648  ;;  %3440 = vmatprep.mubr.msk.f32.mxu0 %vm2805_vm15, %v3647_v56  ;;  %v5061_v45 = vmul.f32 %v1318_v12, %v4768_v23  ;;  %v5080_v12 = vstv %s2838_s4 }
 0x414   :  { %3441 = vmatmul.mubr.msk.f32.vlgmr.msra.gmra.mxu0 %vm2807_vm0, %v3649_v6  ;;  %v1298_v57 = vpop.permute.xlu0 %1297 }
 0x415   :  { %3497 = vmatpush3.msra.mxu0 %v4804_v25  ;;  %v4980_v40 = vmul.f32 %v1298_v57, %v4755_v15  ;;  %v2006_v15 = vld [vmem:[%s5160_s7 + $0x8] sm:$0xff] }
 0x416   :  { %v3651_v14 = vpop.eup %3650  ;;  %3498 = vmatprep.subr.mxu0 %v4869_v19  ;;  %3480 = vmatprep.subr.mxu1 %v2006_v15  ;;  %v1323_v42 = vpop.permute.xlu1 %1322 }
 0x417   :  { %v3653_v29 = vpop.eup %3652  ;;  %3499 = vmatpush3.msra.mxu0 %v4869_v19  ;;  %3443 = vmatprep.mubr.msk.f32.mxu0 %vm2809_vm3, %v3651_v14  ;;  %v5065_v37 = vmul.f32 %v4758_v21, %v1323_v42 }
 0x418   :  { %3500 = vmatprep.subr.mxu0 %v4876_v48  ;;  %3444 = vmatmul.mubr.msk.f32.gmra.mxu0 %vm2811_vm4, %v3653_v29  ;;  %v1303_v9 = vpop.permute.xlu0 %1302 }
 0x419   :  { %3501 = vmatpush3.msra.mxu0 %v4876_v48  ;;  %v4984_v20 = vmul.f32 %v4746_v58, %v1303_v9  ;;  %3481 = vmatpush3.msra.mxu1 %v2006_v15  ;;  %v2005_v58 = vld [vmem:[%s5160_s7] sm:$0xff]  ;;  %s2839_s7 = sld [smem:[#allocation2 + $0x81]] }
 0x41a   :  { %v3655_v30 = vpop.eup %3654  ;;  %3502 = vmatprep.subr.mxu0 %v4884_v36  ;;  %3482 = vmatprep.subr.mxu1 %v2005_v58  ;;  %v1328_v43 = vpop.permute.xlu1 %1327 }
 0x41b   :  { %v3657_v32 = vpop.eup %3656  ;;  %3503 = vmatpush3.msra.mxu0 %v4884_v36  ;;  %3446 = vmatprep.mubr.msk.f32.mxu0 %vm2813_vm12, %v3655_v30  ;;  %v5071_v52 = vmul.f32 %v4766_v44, %v1328_v43 }
 0x41c   :  { %3504 = vmatprep.subr.mxu0 %v4892_v53  ;;  %3447 = vmatmul.mubr.msk.f32.gmra.mxu0 %vm2815_vm13, %v3657_v32  ;;  %v1308_v54 = vpop.permute.xlu0 %1307 }
 0x41d   :  { %3505 = vmatpush3.msra.mxu0 %v4892_v53  ;;  %v4990_v59 = vmul.f32 %v4751_v16, %v1308_v54  ;;  %3483 = vmatpush3.msra.mxu1 %v2005_v58  ;;  %v2804_v16 = vld [vmem:[%s5159_s6] ss:$0 sm:$0xff]  ;;  %s2837_s6 = sld [smem:[#allocation2 + $0x1]] }
 0x41e   :  { %v3659_v1 = vpop.eup %3658  ;;  %3506 = vmatprep.subr.mxu0 %v4900_v51  ;;  %3540 = vmatprep.subr.mxu1 %v4804_v25 }
 0x41f   :  { %v3661_v31 = vpop.eup %3660  ;;  %3507 = vmatpush3.msra.mxu0 %v4900_v51  ;;  %3449 = vmatprep.mubr.msk.f32.mxu0 %vm2817_vm6, %v3659_v1  ;;  %v5076_v41 = vstv %s2839_s7 }
 0x420   :  { %3508 = vmatprep.subr.mxu0 %v4908_v17  ;;  %3450 = vmatmul.mubr.msk.f32.gmra.mxu0 %vm2819_vm7, %v3661_v31 }
 0x421   :  { %3509 = vmatpush3.msra.mxu0 %v4908_v17  ;;  %3528 = vmatprep.mubr.f32.mxu0 %v4912_v28 }
 0x422   :  { %3510 = vmatprep.subr.mxu0 %v4918_v38 }
 0x423   :  { %3511 = vmatpush3.msra.mxu0 %v4918_v38 }
 0x424   :  { %3512 = vmatprep.subr.mxu0 %v4926_v8 }
 0x425   :  { %3513 = vmatpush3.msra.mxu0 %v4926_v8 }
 0x426   :  { %3514 = vmatprep.subr.mxu0 %v4933_v63 }
 0x427   :  { %3515 = vmatpush3.msra.mxu0 %v4933_v63 }
 0x428   :  { %3516 = vmatprep.subr.mxu0 %v4940_v7 }
 0x429   :  { %3517 = vmatpush3.msra.mxu0 %v4940_v7 }
 0x42a   :  { %3518 = vmatprep.subr.mxu0 %v4947_v35 }
 0x42b   :  { %3519 = vmatpush3.msra.mxu0 %v4947_v35 }
 0x42c   :  { %3520 = vmatprep.subr.mxu0 %v4954_v34 }
 0x42d   :  { %3521 = vmatpush3.msra.mxu0 %v4954_v34 }
 0x42e   :  { %3522 = vmatprep.subr.mxu0 %v4961_v10 }
 0x42f   :  { %3523 = vmatpush3.msra.mxu0 %v4961_v10 }
 0x430   :  { %3524 = vmatprep.subr.mxu0 %v4968_v60 }
 0x431   :  { %3525 = vmatpush3.msra.mxu0 %v4968_v60 }
 0x432   :  { %3526 = vmatprep.subr.mxu0 %v4975_v62 }
 0x433   :  { %3527 = vmatpush3.msra.mxu0 %v4975_v62 }
 0x434   :  { %3529 = vmatmul.mubr.f32.vlgmr.msra.gmra.mxu0 %v4980_v40 }
 0x435   :  { %3531 = vmatprep.mubr.f32.mxu0 %v4984_v20 }
 0x438   :  { %3532 = vmatmul.mubr.f32.gmra.mxu0 %v4990_v59 }
 0x4d4   :  { %v3442_v55 = vpop.f32.mrf.mxu0 }
 0x4d5   :  { %v5005_v39 = vadd.f32 %v3442_v55, %v2804_v16 }
 0x4d6   :  { %v1966_v2 = vpop.f32.mrf.mxu0 }
 0x4d7   :  { %v5003_v4 = vadd.f32 %v2804_v16, %v1966_v2 }
 0x4d8   :  { %v3445_v26 = vpop.f32.mrf.mxu0 }
 0x4d9   :  { %3484 = vmatprep.mubr.f32.mxu1 %v5003_v4  ;;  %v5012_v5 = vadd.f32 %v3445_v26, %v2804_v16 }
 0x4da   :  { %v1976_v3 = vpop.f32.mrf.mxu0  ;;  %3485 = vmatmul.mubr.f32.vlgmr.msra.gmra.mxu1 %v5005_v39 }
 0x4db   :  { %v5009_v13 = vadd.f32 %v2804_v16, %v1976_v3  ;;  %3556 = vmatpush3.msra.mxu1 %v4804_v25 }
 0x4dc   :  { %3541 = vmatprep.subr.mxu1 %v4869_v19  ;;  %v3448_v50 = vpop.f32.mrf.mxu0 }
 0x4dd   :  { %3557 = vmatpush3.msra.mxu1 %v4869_v19  ;;  %3487 = vmatprep.mubr.f32.mxu1 %v5009_v13  ;;  %v5022_v27 = vadd.f32 %v3448_v50, %v2804_v16 }
 0x4de   :  { %3542 = vmatprep.subr.mxu1 %v4876_v48  ;;  %v1986_v22 = vpop.f32.mrf.mxu0  ;;  %3488 = vmatmul.mubr.f32.gmra.mxu1 %v5012_v5 }
 0x4df   :  { %v5019_v24 = vadd.f32 %v2804_v16, %v1986_v22  ;;  %3558 = vmatpush3.msra.mxu1 %v4876_v48  ;;  %v5074_v22 = vstv %s2837_s6 }
 0x4e0   :  { %3543 = vmatprep.subr.mxu1 %v4884_v36  ;;  %v3451_v25 = vpop.f32.mrf.mxu0 }
 0x4e1   :  { %3559 = vmatpush3.msra.mxu1 %v4884_v36  ;;  %3490 = vmatprep.mubr.f32.mxu1 %v5019_v24  ;;  %v5032_v0 = vadd.f32 %v3451_v25, %v2804_v16 }
 0x4e2   :  { %3544 = vmatprep.subr.mxu1 %v4892_v53  ;;  %v1996_v18 = vpop.f32.mrf.mxu0  ;;  %3491 = vmatmul.mubr.f32.gmra.mxu1 %v5022_v27 }
 0x4e3   :  { %v5029_v49 = vadd.f32 %v2804_v16, %v1996_v18  ;;  %3560 = vmatpush3.msra.mxu1 %v4892_v53  ;;  %v5078_v18 = vstv %s2343_s17 }
 0x4e4   :  { %3545 = vmatprep.subr.mxu1 %v4900_v51 }
 0x4e5   :  { %3561 = vmatpush3.msra.mxu1 %v4900_v51  ;;  %3493 = vmatprep.mubr.f32.mxu1 %v5029_v49 }
 0x4e6   :  { %3546 = vmatprep.subr.mxu1 %v4908_v17  ;;  %3494 = vmatmul.mubr.f32.gmra.mxu1 %v5032_v0 }
 0x4e7   :  { %3562 = vmatpush3.msra.mxu1 %v4908_v17  ;;  %3534 = vmatprep.mubr.f32.mxu1 %v5036_v11 }
 0x4e8   :  { %3547 = vmatprep.subr.mxu1 %v4918_v38 }
 0x4e9   :  { %3563 = vmatpush3.msra.mxu1 %v4918_v38 }
 0x4ea   :  { %3548 = vmatprep.subr.mxu1 %v4926_v8 }
 0x4eb   :  { %3564 = vmatpush3.msra.mxu1 %v4926_v8 }
 0x4ec   :  { %3549 = vmatprep.subr.mxu1 %v4933_v63 }
 0x4ed   :  { %3565 = vmatpush3.msra.mxu1 %v4933_v63 }
 0x4ee   :  { %3550 = vmatprep.subr.mxu1 %v4940_v7 }
 0x4ef   :  { %3566 = vmatpush3.msra.mxu1 %v4940_v7 }
 0x4f0   :  { %3551 = vmatprep.subr.mxu1 %v4947_v35 }
 0x4f1   :  { %3567 = vmatpush3.msra.mxu1 %v4947_v35 }
 0x4f2   :  { %3552 = vmatprep.subr.mxu1 %v4954_v34 }
 0x4f3   :  { %3568 = vmatpush3.msra.mxu1 %v4954_v34 }
 0x4f4   :  { %3553 = vmatprep.subr.mxu1 %v4961_v10  ;;  %v3530_v46 = vpop.f32.mrf.mxu0 }
 0x4f5   :  { %3569 = vmatpush3.msra.mxu1 %v4961_v10  ;;  %v2830_v33 = vmul.f32 -1.442695, %v3530_v46 }
 0x4f6   :  { %3554 = vmatprep.subr.mxu1 %v4968_v60  ;;  %v2208_v23 = vpop.f32.mrf.mxu0 }
 0x4f7   :  { %3570 = vmatpush3.msra.mxu1 %v4968_v60  ;;  %v2829_v56 = vmul.f32 -1.442695, %v2208_v23  ;;  %3662 = vpow2.f32 %v2830_v33 }
 0x4f8   :  { %3555 = vmatprep.subr.mxu1 %v4975_v62  ;;  %v3533_v47 = vpop.f32.mrf.mxu0 }
 0x4f9   :  { %3571 = vmatpush3.msra.mxu1 %v4975_v62  ;;  %v2832_v21 = vmul.f32 -1.442695, %v3533_v47  ;;  %3664 = vpow2.f32 %v2829_v56 }
 0x4fa   :  { %3535 = vmatmul.mubr.f32.vlgmr.msra.gmra.mxu1 %v5061_v45  ;;  %v2218_v6 = vpop.f32.mrf.mxu0 }
 0x4fb   :  { %3537 = vmatprep.mubr.f32.mxu1 %v5065_v37  ;;  %v2831_v19 = vmul.f32 -1.442695, %v2218_v6  ;;  %3666 = vpow2.f32 %v2832_v21 }
 0x4fd   :  { %3668 = vpow2.f32 %v2831_v19 }
 0x4fe   :  { %3538 = vmatmul.mubr.f32.gmra.mxu1 %v5071_v52 }
 0x504   :  { %v3663_v51 = vpop.eup %3662 }
 0x505   :  { %v2320_v31 = vadd.f32 1.0, %v3663_v51 }
 0x506   :  { %v3665_v61 = vpop.eup %3664 }
 0x507   :  { %v2319_v8 = vadd.f32 1.0, %v3665_v61 }
 0x508   :  { %v3667_v17 = vpop.eup %3666 }
 0x509   :  { %v2322_v63 = vadd.f32 1.0, %v3667_v17 }
 0x50a   :  { %v3669_v38 = vpop.eup %3668 }
 0x50b   :  { %v2321_v35 = vadd.f32 1.0, %v3669_v38 }
 0x59a   :  { %v3486_v48 = vpop.f32.mrf.mxu1 }
 0x59b   :  { %v2822_v14 = vmul.f32 -1.442695, %v3486_v48 }
 0x59c   :  { %v2087_v29 = vpop.f32.mrf.mxu1 }
 0x59d   :  { %3670 = vpow2.f32 %v2822_v14  ;;  %v2821_v44 = vmul.f32 -1.442695, %v2087_v29 }
 0x59e   :  { %v3489_v36 = vpop.f32.mrf.mxu1 }
 0x59f   :  { %3672 = vpow2.f32 %v2821_v44  ;;  %v2824_v53 = vmul.f32 -1.442695, %v3489_v36 }
 0x5a0   :  { %v2097_v30 = vpop.f32.mrf.mxu1 }
 0x5a1   :  { %3674 = vpow2.f32 %v2824_v53  ;;  %v2823_v32 = vmul.f32 -1.442695, %v2097_v30 }
 0x5a2   :  { %v3492_v1 = vpop.f32.mrf.mxu1 }
 0x5a3   :  { %3676 = vpow2.f32 %v2823_v32  ;;  %v2826_v54 = vmul.f32 -1.442695, %v3492_v1 }
 0x5a4   :  { %v2107_v7 = vpop.f32.mrf.mxu1  ;;  %3678 = vrcp.f32 %v2320_v31 }
 0x5a5   :  { %3680 = vrcp.f32 %v2319_v8  ;;  %v2825_v16 = vmul.f32 -1.442695, %v2107_v7 }
 0x5a6   :  { %3682 = vrcp.f32 %v2322_v63  ;;  %v3495_v60 = vpop.f32.mrf.mxu1 }
 0x5a7   :  { %v2828_v26 = vmul.f32 -1.442695, %v3495_v60 }
 0x5a8   :  { %v2117_v2 = vpop.f32.mrf.mxu1 }
 0x5a9   :  { %v2827_v3 = vmul.f32 -1.442695, %v2117_v2 }
 0x5aa   :  { %v3671_v57 = vpop.eup %3670 }
 0x5ab   :  { %v2272_v34 = vadd.f32 1.0, %v3671_v57 }
 0x5ac   :  { %v3673_v10 = vpop.eup %3672 }
 0x5ad   :  { %3684 = vrcp.f32 %v2272_v34  ;;  %v2271_v9 = vadd.f32 1.0, %v3673_v10 }
 0x5ae   :  { %v3675_v62 = vpop.eup %3674  ;;  %3686 = vrcp.f32 %v2321_v35 }
 0x5af   :  { %3688 = vrcp.f32 %v2271_v9  ;;  %v2274_v15 = vadd.f32 1.0, %v3675_v62 }
 0x5b0   :  { %v3677_v58 = vpop.eup %3676 }
 0x5b1   :  { %3690 = vrcp.f32 %v2274_v15  ;;  %v2273_v55 = vadd.f32 1.0, %v3677_v58  ;;  %v3679_v50 = vpop.eup %3678 }
 0x5b2   :  { %3692 = vpow2.f32 %v2826_v54  ;;  %v3681_v25 = vpop.eup %3680  ;;  %v2358_v46 = vmul.f32 %v3679_v50, %v5074_v22  ;;  %v2392_v33 = vmul.f32 %v3679_v50, %v5076_v41 }
 0x5b3   :  { %3694 = vrcp.f32 %v2273_v55  ;;  %v3683_v42 = vpop.eup %3682  ;;  %v2357_v48 = vmul.f32 %v3681_v25, %v5074_v22  ;;  %v2391_v14 = vmul.f32 %v3681_v25, %v5076_v41 }
 0x5b4   :  { %3696 = vpow2.f32 %v2825_v16  ;;  %v2360_v29 = vmul.f32 %v3683_v42, %v5074_v22  ;;  %v2394_v61 = vmul.f32 %v3683_v42, %v5076_v41 }
 0x5b5   :  { %3698 = vpow2.f32 %v2828_v26 }
 0x5b6   :  { %3700 = vpow2.f32 %v2827_v3 }
 0x5ba   :  { %v3685_v43 = vpop.eup %3684  ;;  %v3536_v23 = vpop.f32.mrf.mxu1 }
 0x5bb   :  { %v3687_v47 = vpop.eup %3686  ;;  %v2349_v56 = vmul.f32 %v3685_v43, %v5078_v18  ;;  %v2383_v6 = vmul.f32 %v3685_v43, %v5080_v12  ;;  %v2834_v21 = vmul.f32 -1.442695, %v3536_v23 }
 0x5bc   :  { %v3689_v19 = vpop.eup %3688  ;;  %v2228_v44 = vpop.f32.mrf.mxu1  ;;  %v2359_v17 = vmul.f32 %v3687_v47, %v5074_v22  ;;  %v2393_v8 = vmul.f32 %v3687_v47, %v5076_v41 }
 0x5bd   :  { %v2366_v36 = vadd.f32 %v2358_v46, %v2349_v56  ;;  %v2400_v53 = vadd.f32 %v2392_v33, %v2383_v6  ;;  %v2348_v30 = vmul.f32 %v3689_v19, %v5078_v18  ;;  %v2382_v32 = vmul.f32 %v3689_v19, %v5080_v12 }
 0x5be   :  { %v3691_v51 = vpop.eup %3690  ;;  %3702 = vpow2.f32 %v2834_v21  ;;  %v2833_v1 = vmul.f32 -1.442695, %v2228_v44  ;;  %v3539_v31 = vpop.f32.mrf.mxu1 }
 0x5bf   :  { %v3693_v38 = vpop.eup %3692  ;;  %v2408_v63 = vmul.f32 0.5, %v2400_v53  ;;  %v2399_v7 = vadd.f32 %v2391_v14, %v2382_v32  ;;  %v2351_v57 = vmul.f32 %v3691_v51, %v5078_v18  ;;  %v2385_v34 = vmul.f32 %v3691_v51, %v5080_v12 }
 0x5c0   :  { %v3695_v35 = vpop.eup %3694  ;;  %3704 = vpow2.f32 %v2833_v1  ;;  %v2836_v10 = vmul.f32 -1.442695, %v3539_v31  ;;  %v2238_v9 = vpop.f32.mrf.mxu1  ;;  %v2374_v60 = vmul.f32 0.5, %v2366_v36  ;;  %v2365_v62 = vadd.f32 %v2357_v48, %v2348_v30 }
 0x5c1   :  { %v2368_v54 = vadd.f32 %v2360_v29, %v2351_v57  ;;  %v2350_v15 = vmul.f32 %v3695_v35, %v5078_v18  ;;  %v2384_v58 = vmul.f32 %v3695_v35, %v5080_v12  ;;  %v3697_v55 = vpop.eup %3696  ;;  %v2402_v16 = vadd.f32 %v2394_v61, %v2385_v34 }
 0x5c2   :  { %3706 = vpow2.f32 %v2836_v10  ;;  %v2835_v2 = vmul.f32 -1.442695, %v2238_v9  ;;  %v2416_v26 = vmax.f32 %v2374_v60, %v2408_v63  ;;  %v2407_v3 = vmul.f32 0.5, %v2399_v7  ;;  %v3699_v43 = vpop.eup %3698 }
 0x5c3   :  { %v2367_v50 = vadd.f32 %v2359_v17, %v2350_v15  ;;  %v2401_v25 = vadd.f32 %v2393_v8, %v2384_v58  ;;  %v2276_v42 = vadd.f32 1.0, %v3693_v38  ;;  %v2410_v46 = vmul.f32 0.5, %v2402_v16  ;;  %v3701_v33 = vpop.eup %3700 }
 0x5c4   :  { %3708 = vpow2.f32 %v2835_v2  ;;  %v2424_v23 = vsub.f32 %v2374_v60, %v2416_v26  ;;  %v2448_v47 = vsub.f32 %v2408_v63, %v2416_v26  ;;  %v2275_v6 = vadd.f32 1.0, %v3697_v55 }
 0x5c5   :  { %v2409_v56 = vmul.f32 0.5, %v2401_v25  ;;  %v2373_v21 = vmul.f32 0.5, %v2365_v62  ;;  %v2376_v14 = vmul.f32 0.5, %v2368_v54  ;;  %v2375_v29 = vmul.f32 0.5, %v2367_v50 }
 0x5c6   :  { %v2433_v19 = vmul.f32 1.442695, %v2424_v23  ;;  %v2457_v48 = vmul.f32 1.442695, %v2448_v47  ;;  %3710 = vrcp.f32 %v2276_v42  ;;  %v2278_v44 = vadd.f32 1.0, %v3699_v43 }
 0x5c7   :  { %v2415_v36 = vmax.f32 %v2373_v21, %v2407_v3  ;;  %v2277_v53 = vadd.f32 1.0, %v3701_v33  ;;  %v2418_v30 = vmax.f32 %v2376_v14, %v2410_v46  ;;  %v2417_v51 = vmax.f32 %v2375_v29, %v2409_v56 }
 0x5c8   :  { %3712 = vpow2.f32 %v2433_v19 }
 0x5c9   :  { %3714 = vpow2.f32 %v2457_v48  ;;  %v2423_v32 = vsub.f32 %v2373_v21, %v2415_v36  ;;  %v2447_v61 = vsub.f32 %v2407_v3, %v2415_v36  ;;  %v2426_v17 = vsub.f32 %v2376_v14, %v2418_v30 }
 0x5ca   :  { %3716 = vrcp.f32 %v2275_v6  ;;  %v2450_v38 = vsub.f32 %v2410_v46, %v2418_v30  ;;  %v2425_v35 = vsub.f32 %v2375_v29, %v2417_v51  ;;  %v2449_v10 = vsub.f32 %v2409_v56, %v2417_v51 }
 0x5cb   :  { %v3703_v1 = vpop.eup %3702  ;;  %3718 = vrcp.f32 %v2278_v44  ;;  %v2431_v31 = vmul.f32 1.442695, %v2423_v32  ;;  %v2455_v63 = vmul.f32 1.442695, %v2447_v61  ;;  %v2437_v57 = vmul.f32 1.442695, %v2426_v17 }
 0x5cc   :  { %3720 = vrcp.f32 %v2277_v53  ;;  %v2324_v8 = vadd.f32 1.0, %v3703_v1  ;;  %v2461_v60 = vmul.f32 1.442695, %v2450_v38  ;;  %v2435_v15 = vmul.f32 1.442695, %v2425_v35 }
 0x5cd   :  { %v3705_v7 = vpop.eup %3704  ;;  %3722 = vpow2.f32 %v2431_v31  ;;  %v2459_v55 = vmul.f32 1.442695, %v2449_v10 }
 0x5ce   :  { %3724 = vrcp.f32 %v2324_v8  ;;  %v2323_v34 = vadd.f32 1.0, %v3705_v7 }
 0x5cf   :  { %v3707_v9 = vpop.eup %3706  ;;  %3726 = vpow2.f32 %v2455_v63 }
 0x5d0   :  { %3728 = vrcp.f32 %v2323_v34  ;;  %v2326_v62 = vadd.f32 1.0, %v3707_v9 }
 0x5d1   :  { %v3709_v54 = vpop.eup %3708  ;;  %3730 = vpow2.f32 %v2437_v57 }
 0x5d2   :  { %3732 = vrcp.f32 %v2326_v62  ;;  %v2325_v58 = vadd.f32 1.0, %v3709_v54 }
 0x5d3   :  { %3734 = vpow2.f32 %v2461_v60  ;;  %v3711_v16 = vpop.eup %3710 }
 0x5d4   :  { %3736 = vrcp.f32 %v2325_v58  ;;  %v2353_v47 = vmul.f32 %v3711_v16, %v5078_v18  ;;  %v2387_v33 = vmul.f32 %v3711_v16, %v5080_v12 }
 0x5d5   :  { %v3713_v2 = vpop.eup %3712  ;;  %3738 = vpow2.f32 %v2435_v15 }
 0x5d6   :  { %v5098_v26 = vpop.eup %3714  ;;  %3740 = vpow2.f32 %v2459_v55 }
 0x5d7   :  { %v3717_v3 = vpop.eup %3716  ;;  %v2472_v50 = vadd.f32 %v5098_v26, %v3713_v2 }
 0x5d8   :  { %v3719_v25 = vpop.eup %3718  ;;  %v2352_v19 = vmul.f32 %v3717_v3, %v5078_v18  ;;  %v2386_v48 = vmul.f32 %v3717_v3, %v5080_v12 }
 0x5d9   :  { %v3721_v42 = vpop.eup %3720  ;;  %3742 = vrcp.f32 %v2472_v50  ;;  %v2355_v51 = vmul.f32 %v3719_v25, %v5078_v18  ;;  %v2389_v61 = vmul.f32 %v3719_v25, %v5080_v12 }
 0x5da   :  { %v5101_v43 = vpop.eup %3722  ;;  %v2354_v17 = vmul.f32 %v3721_v42, %v5078_v18  ;;  %v2388_v57 = vmul.f32 %v3721_v42, %v5080_v12 }
 0x5db   :  { %v3725_v46 = vpop.eup %3724 }
 0x5dc   :  { %v5103_v23 = vpop.eup %3726  ;;  %v2362_v56 = vmul.f32 %v3725_v46, %v5074_v22  ;;  %v2396_v6 = vmul.f32 %v3725_v46, %v5076_v41 }
 0x5dd   :  { %v3729_v21 = vpop.eup %3728  ;;  %v2471_v14 = vadd.f32 %v5103_v23, %v5101_v43 }
 0x5de   :  { %v5113_v29 = vpop.eup %3730  ;;  %v2370_v44 = vadd.f32 %v2362_v56, %v2353_v47  ;;  %v2404_v36 = vadd.f32 %v2396_v6, %v2387_v33  ;;  %v2361_v53 = vmul.f32 %v3729_v21, %v5074_v22  ;;  %v2395_v30 = vmul.f32 %v3729_v21, %v5076_v41 }
 0x5df   :  { %v3733_v32 = vpop.eup %3732  ;;  %3744 = vrcp.f32 %v2471_v14 }
 0x5e0   :  { %v5120_v1 = vpop.eup %3734  ;;  %v2412_v31 = vmul.f32 0.5, %v2404_v36  ;;  %v2369_v38 = vadd.f32 %v2361_v53, %v2352_v19  ;;  %v2403_v8 = vadd.f32 %v2395_v30, %v2386_v48  ;;  %v2364_v63 = vmul.f32 %v3733_v32, %v5074_v22 }
 0x5e1   :  { %v3737_v7 = vpop.eup %3736  ;;  %v2398_v35 = vmul.f32 %v3733_v32, %v5076_v41  ;;  %v2474_v34 = vadd.f32 %v5120_v1, %v5113_v29  ;;  %v2378_v10 = vmul.f32 0.5, %v2370_v44 }
 0x5e2   :  { %v3739_v9 = vpop.eup %3738  ;;  %v2411_v60 = vmul.f32 0.5, %v2403_v8  ;;  %v2372_v18 = vadd.f32 %v2364_v63, %v2355_v51  ;;  %v2363_v62 = vmul.f32 %v3737_v7, %v5074_v22  ;;  %v2397_v54 = vmul.f32 %v3737_v7, %v5076_v41 }
 0x5e3   :  { %v3741_v15 = vpop.eup %3740  ;;  %v2406_v58 = vadd.f32 %v2398_v35, %v2389_v61  ;;  %3746 = vrcp.f32 %v2474_v34  ;;  %v2420_v55 = vmax.f32 %v2378_v10, %v2412_v31  ;;  %v2377_v16 = vmul.f32 0.5, %v2369_v38 }
 0x5e4   :  { %v2371_v3 = vadd.f32 %v2363_v62, %v2354_v17  ;;  %v2405_v12 = vadd.f32 %v2397_v54, %v2388_v57  ;;  %v2473_v50 = vadd.f32 %v3741_v15, %v3739_v9  ;;  %v2380_v25 = vmul.f32 0.5, %v2372_v18 }
 0x5e5   :  { %v2414_v42 = vmul.f32 0.5, %v2406_v58  ;;  %v2428_v46 = vsub.f32 %v2378_v10, %v2420_v55  ;;  %v2452_v47 = vsub.f32 %v2412_v31, %v2420_v55  ;;  %v2419_v33 = vmax.f32 %v2377_v16, %v2411_v60 }
 0x5e6   :  { %v3743_v56 = vpop.eup %3742  ;;  %v2379_v6 = vmul.f32 0.5, %v2371_v3  ;;  %v2413_v21 = vmul.f32 0.5, %v2405_v12  ;;  %3748 = vrcp.f32 %v2473_v50 }
 0x5e7   :  { %v2488_v22 = vmul.f32 %v3743_v56, %v3713_v2  ;;  %v2441_v19 = vmul.f32 1.442695, %v2428_v46  ;;  %v2465_v41 = vmul.f32 1.442695, %v2452_v47  ;;  %v2427_v48 = vsub.f32 %v2377_v16, %v2419_v33 }
 0x5e8   :  { %v2451_v14 = vsub.f32 %v2411_v60, %v2419_v33  ;;  %v2422_v44 = vmax.f32 %v2380_v25, %v2414_v42  ;;  %v2421_v36 = vmax.f32 %v2379_v6, %v2413_v21  ;;  %v2496_v51 = vmul.f32 %v3743_v56, %v5098_v26 }
 0x5e9   :  { %2510 = vperm.xlu1 %3581, %v2488_v22   ;;  %3750 = vpow2.f32 %v2441_v19  ;;  %v2439_v53 = vmul.f32 1.442695, %v2427_v48 }
 0x5ea   :  { %3752 = vpow2.f32 %v2465_v41  ;;  %v2463_v30 = vmul.f32 1.442695, %v2451_v14  ;;  %v2430_v32 = vsub.f32 %v2380_v25, %v2422_v44  ;;  %v2454_v61 = vsub.f32 %v2414_v42, %v2422_v44 }
 0x5eb   :  { %v2429_v17 = vsub.f32 %v2379_v6, %v2421_v36  ;;  %v2453_v31 = vsub.f32 %v2413_v21, %v2421_v36  ;;  %3754 = vpow2.f32 %v2439_v53 }
 0x5ec   :  { %v3745_v38 = vpop.eup %3744  ;;  %v2445_v2 = vmul.f32 1.442695, %v2430_v32  ;;  %3756 = vpow2.f32 %v2463_v30  ;;  %v2469_v63 = vmul.f32 1.442695, %v2454_v61 }
 0x5ed   :  { %v2487_v8 = vmul.f32 %v3745_v38, %v5101_v43  ;;  %2558 = vperm.xlu1 %3581, %v2496_v51   ;;  %v2443_v7 = vmul.f32 1.442695, %v2429_v17  ;;  %v2467_v57 = vmul.f32 1.442695, %v2453_v31  ;;  %v2495_v26 = vmul.f32 %v3745_v38, %v5103_v23 }
 0x5ee   :  { %3758 = vpow2.f32 %v2445_v2 }
 0x5ef   :  { %2505 = vperm.xlu0 %3580, %v2487_v8   ;;  %3760 = vpow2.f32 %v2469_v63 }
 0x5f0   :  { %v3747_v35 = vpop.eup %3746  ;;  %3762 = vpow2.f32 %v2443_v7 }
 0x5f1   :  { %v2490_v34 = vmul.f32 %v3747_v35, %v5113_v29  ;;  %3764 = vpow2.f32 %v2467_v57  ;;  %v2498_v43 = vmul.f32 %v3747_v35, %v5120_v1 }
 0x5f3   :  { %v3749_v10 = vpop.eup %3748  ;;  %2553 = vperm.xlu0 %3580, %v2495_v26   ;;  %2520 = vperm.xlu1 %3581, %v2490_v34  }
 0x5f4   :  { %v2489_v60 = vmul.f32 %v3749_v10, %v3739_v9  ;;  %v2497_v55 = vmul.f32 %v3749_v10, %v3741_v15 }
 0x5f6   :  { %v3751_v18 = vpop.eup %3750 }
 0x5f7   :  { %v3753_v62 = vpop.eup %3752  ;;  %2515 = vperm.xlu0 %3580, %v2489_v60   ;;  %2568 = vperm.xlu1 %3581, %v2498_v43  }
 0x5f8   :  { %v2476_v54 = vadd.f32 %v3753_v62, %v3751_v18  ;;  %v3755_v58 = vpop.eup %3754 }
 0x5f9   :  { %v3757_v16 = vpop.eup %3756 }
 0x5fa   :  { %3766 = vrcp.f32 %v2476_v54  ;;  %v2475_v23 = vadd.f32 %v3757_v16, %v3755_v58 }
 0x5fb   :  { %v3759_v3 = vpop.eup %3758  ;;  %2563 = vperm.xlu0 %3580, %v2497_v55  }
 0x5fc   :  { %v3761_v29 = vpop.eup %3760  ;;  %3768 = vrcp.f32 %v2475_v23 }
 0x5fd   :  { %v3763_v12 = vpop.eup %3762  ;;  %v2478_v50 = vadd.f32 %v3761_v29, %v3759_v3 }
 0x5fe   :  { %v3765_v25 = vpop.eup %3764 }
 0x5ff   :  { %v2477_v9 = vadd.f32 %v3765_v25, %v3763_v12  ;;  %3770 = vrcp.f32 %v2478_v50 }
 0x601   :  { %3772 = vrcp.f32 %v2477_v9 }
 0x607   :  { %v3767_v1 = vpop.eup %3766 }
 0x608   :  { %v2492_v42 = vmul.f32 %v3767_v1, %v3751_v18  ;;  %v2500_v33 = vmul.f32 %v3767_v1, %v3753_v62 }
 0x609   :  { %v3769_v46 = vpop.eup %3768 }
 0x60a   :  { %2530 = vperm.xlu1 %3581, %v2492_v42   ;;  %v2491_v47 = vmul.f32 %v3769_v46, %v3755_v58  ;;  %v2499_v56 = vmul.f32 %v3769_v46, %v3757_v16 }
 0x60c   :  { %v3771_v15 = vpop.eup %3770  ;;  %2525 = vperm.xlu0 %3580, %v2491_v47  }
 0x60d   :  { %v2494_v21 = vmul.f32 %v3771_v15, %v3759_v3  ;;  %v2502_v19 = vmul.f32 %v3771_v15, %v3761_v29 }
 0x60e   :  { %2578 = vperm.xlu1 %3581, %v2500_v33   ;;  %v3773_v6 = vpop.eup %3772 }
 0x60f   :  { %v2493_v22 = vmul.f32 %v3773_v6, %v3763_v12  ;;  %v2501_v41 = vmul.f32 %v3773_v6, %v3765_v25 }
 0x610   :  { %2573 = vperm.xlu0 %3580, %v2499_v56  }
 0x612   :  { %2540 = vperm.xlu1 %3581, %v2494_v21  }
 0x614   :  { %2535 = vperm.xlu0 %3580, %v2493_v22  }
 0x616   :  { %2588 = vperm.xlu1 %3581, %v2502_v19  }
 0x618   :  { %2583 = vperm.xlu0 %3580, %v2501_v41  }
 0x664   :  { %v2511_v48 = vpop.permute.xlu1 %2510 }
 0x665   :  { %v2544_v44 = vmul.f32 %v2511_v48, %v5005_v39 }
 0x668   :  { %v2559_v14 = vpop.permute.xlu1 %2558 }
 0x669   :  { %v2592_v36 = vmul.f32 %v2559_v14, %v4980_v40 }
 0x66a   :  { %v2506_v53 = vpop.permute.xlu0 %2505 }
 0x66b   :  { %v2600_v30 = vadd.f32 %v2592_v36, %v2544_v44  ;;  %v2543_v61 = vmul.f32 %v2506_v53, %v5003_v4 }
 0x66d   :  { %2608 = vst [vmem:[#allocation5 + $0x8] sm:$0xff] %v2600_v30 }
 0x66e   :  { %v2554_v32 = vpop.permute.xlu0 %2553  ;;  %v2521_v51 = vpop.permute.xlu1 %2520 }
 0x66f   :  { %v2591_v17 = vmul.f32 %v2554_v32, %v4912_v28  ;;  %v2546_v8 = vmul.f32 %v2521_v51, %v5012_v5 }
 0x671   :  { %v2599_v31 = vadd.f32 %v2591_v17, %v2543_v61 }
 0x672   :  { %v2516_v38 = vpop.permute.xlu0 %2515  ;;  %v2569_v2 = vpop.permute.xlu1 %2568 }
 0x673   :  { %2607 = vst [vmem:[#allocation5] sm:$0xff] %v2599_v31  ;;  %v2594_v63 = vmul.f32 %v2569_v2, %v4990_v59  ;;  %v2545_v40 = vmul.f32 %v2516_v38, %v5009_v13 }
 0x675   :  { %v2602_v39 = vadd.f32 %v2594_v63, %v2546_v8 }
 0x676   :  { %v2564_v7 = vpop.permute.xlu0 %2563 }
 0x677   :  { %2610 = vst [vmem:[#allocation5 + $0x18] sm:$0xff] %v2602_v39  ;;  %v2593_v57 = vmul.f32 %v2564_v7, %v4984_v20 }
 0x679   :  { %v2601_v35 = vadd.f32 %v2593_v57, %v2545_v40 }
 0x67b   :  { %2609 = vst [vmem:[#allocation5 + $0x10] sm:$0xff] %v2601_v35 }
 0x685   :  { %v2531_v4 = vpop.permute.xlu1 %2530 }
 0x686   :  { %v2548_v34 = vmul.f32 %v2531_v4, %v5022_v27 }
 0x687   :  { %v2526_v26 = vpop.permute.xlu0 %2525 }
 0x688   :  { %v2547_v59 = vmul.f32 %v2526_v26, %v5019_v24 }
 0x689   :  { %v2579_v28 = vpop.permute.xlu1 %2578 }
 0x68a   :  { %v2596_v10 = vmul.f32 %v2579_v28, %v5061_v45 }
 0x68b   :  { %v2574_v5 = vpop.permute.xlu0 %2573 }
 0x68c   :  { %v2604_v60 = vadd.f32 %v2596_v10, %v2548_v34  ;;  %v2595_v43 = vmul.f32 %v2574_v5, %v5036_v11 }
 0x68d   :  { %v2541_v18 = vpop.permute.xlu1 %2540 }
 0x68e   :  { %2612 = vst [vmem:[#allocation5 + $0x28] sm:$0xff] %v2604_v60  ;;  %v2603_v13 = vadd.f32 %v2595_v43, %v2547_v59  ;;  %v2550_v54 = vmul.f32 %v2541_v18, %v5032_v0 }
 0x68f   :  { %v2536_v62 = vpop.permute.xlu0 %2535 }
 0x690   :  { %2611 = vst [vmem:[#allocation5 + $0x20] sm:$0xff] %v2603_v13  ;;  %v2549_v45 = vmul.f32 %v2536_v62, %v5029_v49 }
 0x691   :  { %v2589_v20 = vpop.permute.xlu1 %2588 }
 0x692   :  { %v2598_v58 = vmul.f32 %v2589_v20, %v5071_v52 }
 0x693   :  { %v2584_v27 = vpop.permute.xlu0 %2583 }
 0x694   :  { %v2606_v55 = vadd.f32 %v2598_v58, %v2550_v54  ;;  %v2597_v24 = vmul.f32 %v2584_v27, %v5065_v37 }
 0x696   :  { %2614 = vst [vmem:[#allocation5 + $0x38] sm:$0xff] %v2606_v55  ;;  %v2605_v11 = vadd.f32 %v2597_v24, %v2549_v45 }
 0x698   :  { %2613 = vst [vmem:[#allocation5 + $0x30] sm:$0xff] %v2605_v11 }
 0x699   :  { %3797 = shalt.err (!%p3794_p9)
}
 0x69a   :  { %s3816_s20 = smov 128   ;;  %s3817_s21 = smov 8  }
 0x69b   :  { %2626 = dma.vmem_to_hbm [thread:$0]  %s2621_s12, 1024, %s5167_s14, [#allocation3], %s3816_s20, %s3816_s20, %s3817_s21  }
 0x69c   :  { %3808 = dma.done.wait [#allocation3], 1024  }
 0x69d   :  { %3809 = vsyncadd [#allocation3], 4294966272 }
 0x69e   :  { %2630 = vsyncpa [#allocation3], 1 }
 0x69f   :  { %2631 = vsyncpa [#allocation4], 1 }

</bundles_post_ra>
